<compile_context>
chip_gen: v6e
topology: v6e:2x2x1
jax: 0.10.0
libtpu: 0.0.40
codegen_flags: <defaults>
</compile_context>

<pallas_src>
import functools

import jax
import jax.numpy as jnp
from jax.experimental import pallas as pl
from jax.experimental.pallas import tpu as pltpu


def _round_up(x, m):
    return (x + m - 1) // m * m


def _vmem_limit_bytes():
    # ~3/4 of physical VMEM, capped at 96 MiB (v5e/v6e: 128 MiB, v7x: 64 MiB).
    try:
        cap = int(pltpu.get_tpu_info().vmem_capacity_bytes)
        return int(min(cap * 3 // 4, 96 * 1024 * 1024))
    except Exception:
        return 32 * 1024 * 1024


def _group_size(batch, rtot):
    # Largest divisor of `batch` (<= 8) whose resident image block stays small.
    best = 1
    for g in range(1, min(batch, 8) + 1):
        if batch % g == 0 and g * rtot * 128 * 2 <= 8 * 1024 * 1024:
            best = g
    return best


# ----------------------------------------------------------------------------
# Fused kernel: conv3x3 (taps fused along K) + bias + ReLU + GAP + linear head
# ----------------------------------------------------------------------------
def _fused_kernel(x_ref, mask_ref, cw_ref, cb_ref, hw_ref, hb_ref, o_ref,
                  acc_ref, *, wp, extra):
    # x_ref   : (G, Rtot, Cin)  bf16  flattened zero-padded images (one group)
    # mask_ref: (1, TR)         f32   1/(H*W) on valid output rows, else 0
    # cw_ref  : (9*Cin, F_pad)  bf16  fused 3x3 conv weight (taps along K)
    # cb_ref  : (1, F_pad)      f32   conv bias
    # hw_ref  : (F_pad, C_pad)  bf16  head weight (selected dataset)
    # hb_ref  : (1, C_pad)      f32   head bias
    # o_ref   : (G, C_pad)      f32   logits for this image group
    # acc_ref : (G, F_pad)      f32   GAP accumulator (lives across row tiles)
    t = pl.program_id(1)
    g_imgs = x_ref.shape[0]
    tr = mask_ref.shape[1]

    @pl.when(t == 0)
    def _init():
        acc_ref[...] = jnp.zeros_like(acc_ref)

    base = pl.multiple_of(t * tr, tr)
    mask_row = mask_ref[...]                                   # (1, TR) f32

    for g in range(g_imgs):
        # One aligned slab load covering all 9 tap windows for this row tile.
        slab = x_ref[g, pl.ds(base, tr + extra), :]            # (TR+extra, Cin)
        parts = []
        for dh in range(3):
            for dw in range(3):
                off = dh * wp + dw
                parts.append(slab[off:off + tr, :])            # (TR, Cin)
        patch = jnp.concatenate(parts, axis=1)                 # (TR, 9*Cin) bf16

        conv = jnp.dot(patch, cw_ref[...],
                       preferred_element_type=jnp.float32)     # (TR, F_pad)
        conv = jnp.maximum(conv + cb_ref[...], 0.0)            # bias + ReLU

        # Masked mean contribution of this tile on the MXU (mask has 1/(H*W)).
        pooled = jnp.dot(mask_row, conv,
                         preferred_element_type=jnp.float32)   # (1, F_pad)
        acc_ref[pl.ds(g, 1), :] = acc_ref[pl.ds(g, 1), :] + pooled

    @pl.when(t == pl.num_programs(1) - 1)
    def _finalize():
        feats = acc_ref[...].astype(jnp.bfloat16)              # (G, F_pad)
        logits = jnp.dot(feats, hw_ref[...],
                         preferred_element_type=jnp.float32) + hb_ref[...]
        o_ref[...] = logits                                    # lane-dense


def conv_gap_head(x_flat, mask, conv_w, conv_b, head_w, head_b, *,
                  wp, tile_rows, extra, group):
    B, rtot, cin = x_flat.shape
    q_pad = mask.shape[1]
    n_t = q_pad // tile_rows
    f_pad = conv_w.shape[1]
    c_pad = head_w.shape[1]
    n_groups = B // group

    kernel = functools.partial(_fused_kernel, wp=wp, extra=extra)
    out = pl.pallas_call(
        kernel,
        out_shape=jax.ShapeDtypeStruct((n_groups, group, c_pad), jnp.float32),
        grid=(n_groups, n_t),
        in_specs=[
            pl.BlockSpec((group, rtot, cin), lambda b, t: (b, 0, 0)),  # images
            pl.BlockSpec((1, tile_rows), lambda b, t: (0, t)),         # mask
            pl.BlockSpec((9 * cin, f_pad), lambda b, t: (0, 0)),       # conv W
            pl.BlockSpec((1, f_pad), lambda b, t: (0, 0)),             # conv b
            pl.BlockSpec((f_pad, c_pad), lambda b, t: (0, 0)),         # head W
            pl.BlockSpec((1, c_pad), lambda b, t: (0, 0)),             # head b
        ],
        out_specs=pl.BlockSpec((None, group, c_pad), lambda b, t: (b, 0, 0)),
        scratch_shapes=[pltpu.VMEM((group, f_pad), jnp.float32)],
        compiler_params=pltpu.CompilerParams(
            dimension_semantics=("parallel", "arbitrary"),
            vmem_limit_bytes=_vmem_limit_bytes(),
        ),
    )(x_flat, mask, conv_w, conv_b, head_w, head_b)
    return out.reshape(B, c_pad)                               # (B, C_pad)


# ----------------------------------------------------------------------------
# MultiNet forward: backbone(x) -> fc{dataset_name}(features)
# ----------------------------------------------------------------------------
def multinet_forward(params, x_nchw, dataset_name):
    x = jnp.transpose(x_nchw, (0, 2, 3, 1))                    # NCHW -> NHWC
    B, H, W, Cin = x.shape
    Hp, Wp = H + 2, W + 2

    # Row tiling over the flattened (padded-width) output grid.
    Q = H * Wp                                                 # flat conv rows
    TR = 256 if Q > 512 else 128                               # per the review
    n_t = -(-Q // TR)
    Q_pad = n_t * TR
    extra = _round_up(2 * Wp + 2, 8)                           # slab overhang
    Rtot = Q_pad + extra                                       # input rows

    # Flattened, zero-padded bf16 images: (B, Rtot, Cin); DMA'd once per group.
    xp = jnp.pad(x.astype(jnp.bfloat16), ((0, 0), (1, 1), (1, 1), (0, 0)))
    xf = xp.reshape(B, Hp * Wp, Cin)
    xf = jnp.pad(xf, ((0, 0), (0, Rtot - Hp * Wp), (0, 0)))

    # Pool mask (row vector): 1/(H*W) on real pixels, 0 on width-pad / tail.
    q = jnp.arange(Q_pad)
    valid = ((q // Wp) < H) & ((q % Wp) < W)
    mask = jnp.where(valid, 1.0 / (H * W), 0.0).astype(jnp.float32)
    mask = mask.reshape(1, Q_pad)

    group = _group_size(B, Rtot)
    head = params["heads"][dataset_name]
    logits = conv_gap_head(xf, mask, params["conv_w"], params["conv_b"],
                           head["w"], head["b"], wp=Wp, tile_rows=TR,
                           extra=extra, group=group)
    return logits[:, :head["num_classes"]]                     # (B, num_class)


# ----------------------------------------------------------------------------
# Parameter init (padded to lane-dense widths; shapes mirror the PyTorch heads)
# ----------------------------------------------------------------------------
def init_params(key, in_channels, num_features, num_class_dict):
    # 128-aligned pads (bump to 256 multiples on v6e/v7x if dims exceed 128).
    f_pad = _round_up(num_features, 128)
    k_conv, k_cb, k_heads = jax.random.split(key, 3)

    w = jax.random.normal(k_conv, (3, 3, in_channels, num_features),
                          jnp.float32) * 0.05
    w = w.reshape(9 * in_channels, num_features)               # (dh,dw,c) -> K
    cw = jnp.zeros((9 * in_channels, f_pad), jnp.float32)
    cw = cw.at[:, :num_features].set(w)
    conv_w = cw.astype(jnp.bfloat16)                           # MXU-native

    cb = jnp.zeros((1, f_pad), jnp.float32)
    cb = cb.at[:, :num_features].set(
        jax.random.normal(k_cb, (1, num_features), jnp.float32) * 0.01)

    heads = {}
    for i, (name, n_cls) in enumerate(sorted(num_class_dict.items())):
        kw, kb = jax.random.split(jax.random.fold_in(k_heads, i))
        c_pad = _round_up(n_cls, 128)
        hw = jnp.zeros((f_pad, c_pad), jnp.float32)
        hw = hw.at[:num_features, :n_cls].set(
            jax.random.normal(kw, (num_features, n_cls), jnp.float32) * 0.05)
        hb = jnp.zeros((1, c_pad), jnp.float32)
        hb = hb.at[:, :n_cls].set(
            jax.random.normal(kb, (1, n_cls), jnp.float32) * 0.01)
        heads[name] = {"w": hw.astype(jnp.bfloat16), "b": hb,
                       "num_classes": n_cls}

    return {"conv_w": conv_w, "conv_b": cb, "heads": heads}


# ----------------------------------------------------------------------------
# Pure-JAX reference (same bf16 rounding of matmul operands) for validation
# ----------------------------------------------------------------------------
def reference_forward(params, x_nchw, dataset_name):
    x = jnp.transpose(x_nchw, (0, 2, 3, 1))
    xb = x.astype(jnp.bfloat16).astype(jnp.float32)
    B, H, W, Cin = x.shape
    xp = jnp.pad(xb, ((0, 0), (1, 1), (1, 1), (0, 0)))
    cols = []
    for dh in range(3):
        for dw in range(3):
            cols.append(xp[:, dh:dh + H, dw:dw + W, :])
    patches = jnp.concatenate(cols, axis=-1)                   # (B,H,W,9*Cin)
    wf = params["conv_w"].astype(jnp.float32)                  # (9*Cin, F_pad)
    conv = jnp.einsum("bhwk,kf->bhwf", patches, wf) + params["conv_b"][0]
    conv = jnp.maximum(conv, 0.0)
    pooled = conv.mean(axis=(1, 2))                            # (B, F_pad)
    head = params["heads"][dataset_name]
    logits = (pooled.astype(jnp.bfloat16).astype(jnp.float32)
              @ head["w"].astype(jnp.float32)) + head["b"][0]
    return logits[:, :head["num_classes"]]


# TODO(synk): train_step (loss / backward / optimizer) is host-side training
# logic with no Pallas forward-pass equivalent; only forward() is implemented.

if __name__ == "__main__":
    key = jax.random.PRNGKey(0)
    k_params, k_x = jax.random.split(key)

    B, Cin, H, W = 2, 4, 16, 16
    num_features = 32
    num_class_dict = {"cifar": 10, "svhn": 8}

    params = init_params(k_params, Cin, num_features, num_class_dict)
    x = jax.random.normal(k_x, (B, Cin, H, W), jnp.float32)    # NCHW like PyTorch

    fwd = jax.jit(functools.partial(multinet_forward, params),
                  static_argnames=("dataset_name",))

    out_cifar = fwd(x, dataset_name="cifar")
    out_svhn = fwd(x, dataset_name="svhn")
    jax.block_until_ready((out_cifar, out_svhn))

    assert out_cifar.shape == (B, num_class_dict["cifar"])
    assert out_svhn.shape == (B, num_class_dict["svhn"])
    assert bool(jnp.all(jnp.isfinite(out_cifar)))
    assert bool(jnp.all(jnp.isfinite(out_svhn)))

    ref_cifar = reference_forward(params, x, "cifar")
    ref_svhn = reference_forward(params, x, "svhn")
    assert jnp.allclose(out_cifar, ref_cifar, rtol=2e-2, atol=2e-3), (
        float(jnp.max(jnp.abs(out_cifar - ref_cifar))))
    assert jnp.allclose(out_svhn, ref_svhn, rtol=2e-2, atol=2e-3), (
        float(jnp.max(jnp.abs(out_svhn - ref_svhn))))

    print("KERNEL_OK")
</pallas_src>

<mosaic_0001>
module attributes {stable_mosaic.version = 11 : i64} {
  func.func @_fused_kernel(%arg0: i32, %arg1: i32, %arg2: memref<2x424x4xbf16, #tpu.memory_space<vmem>>, %arg3: memref<1x128xf32, #tpu.memory_space<vmem>>, %arg4: memref<36x128xbf16, #tpu.memory_space<vmem>>, %arg5: memref<1x128xf32, #tpu.memory_space<vmem>>, %arg6: memref<128x128xbf16, #tpu.memory_space<vmem>>, %arg7: memref<1x128xf32, #tpu.memory_space<vmem>>, %arg8: memref<1x2x128xf32, #tpu.memory_space<vmem>>, %arg9: memref<2x128xf32, #tpu.memory_space<vmem>>) attributes {dimension_semantics = [#tpu.dimension_semantics<parallel>, #tpu.dimension_semantics<arbitrary>], iteration_bounds = array<i64: 1, 3>, scalar_prefetch = 0 : i64, scratch_operands = 1 : i64, tpu.core_type = #tpu.core_type<tc>, window_params = [{transform_indices = @transform_0, window_bounds = array<i64: 2, 424, 4>}, {transform_indices = @transform_1, window_bounds = array<i64: 1, 128>}, {pipeline_mode = #tpu.pipeline_mode<synchronous>, transform_indices = @transform_2, window_bounds = array<i64: 36, 128>}, {pipeline_mode = #tpu.pipeline_mode<synchronous>, transform_indices = @transform_3, window_bounds = array<i64: 1, 128>}, {pipeline_mode = #tpu.pipeline_mode<synchronous>, transform_indices = @transform_4, window_bounds = array<i64: 128, 128>}, {pipeline_mode = #tpu.pipeline_mode<synchronous>, transform_indices = @transform_5, window_bounds = array<i64: 1, 128>}, {transform_indices = @transform_6, window_bounds = array<i64: 1, 2, 128>}]} {
    %c0_i32 = arith.constant 0 : i32
    %0 = arith.cmpi eq, %arg1, %c0_i32 : i32
    %1 = arith.extui %0 : i1 to i32
    %c0_i32_0 = arith.constant 0 : i32
    %2 = arith.cmpi ne, %1, %c0_i32_0 : i32
    scf.if %2 {
      %cst_27 = arith.constant 0.000000e+00 : f32
      %57 = vector.broadcast %cst_27 : f32 to vector<2x128xf32>
      %c0_28 = arith.constant 0 : index
      %c0_29 = arith.constant 0 : index
      %58 = vector.load %arg9[%c0_28, %c0_29] : memref<2x128xf32, #tpu.memory_space<vmem>>, vector<2x128xf32>
      tpu.vector_store %arg9[%c0_28, %c0_29], %57 {strides = array<i32>} : memref<2x128xf32, #tpu.memory_space<vmem>>, vector<2x128xf32>,
    } else {
    }
    %c128_i32 = arith.constant 128 : i32
    %3 = arith.muli %arg1, %c128_i32 : i32
    %4 = tpu.assume_multiple %3, 128 : i32
    %c0 = arith.constant 0 : index
    %c0_1 = arith.constant 0 : index
    %5 = vector.load %arg3[%c0, %c0_1] : memref<1x128xf32, #tpu.memory_space<vmem>>, vector<1x128xf32>
    %c0_2 = arith.constant 0 : index
    %6 = arith.index_cast %4 : i32 to index
    %c0_3 = arith.constant 0 : index
    %7 = vector.load %arg2[%c0_2, %6, %c0_3] : memref<2x424x4xbf16, #tpu.memory_space<vmem>>, vector<1x168x4xbf16>
    %8 = vector.shape_cast %7 : vector<1x168x4xbf16> to vector<168x4xbf16>
    %9 = vector.extract_strided_slice %8 {offsets = [0, 0], sizes = [128, 4], strides = [1, 1]} : vector<168x4xbf16> to vector<128x4xbf16>
    %10 = vector.extract_strided_slice %8 {offsets = [1, 0], sizes = [128, 4], strides = [1, 1]} : vector<168x4xbf16> to vector<128x4xbf16>
    %11 = vector.extract_strided_slice %8 {offsets = [2, 0], sizes = [128, 4], strides = [1, 1]} : vector<168x4xbf16> to vector<128x4xbf16>
    %12 = vector.extract_strided_slice %8 {offsets = [18, 0], sizes = [128, 4], strides = [1, 1]} : vector<168x4xbf16> to vector<128x4xbf16>
    %13 = vector.extract_strided_slice %8 {offsets = [19, 0], sizes = [128, 4], strides = [1, 1]} : vector<168x4xbf16> to vector<128x4xbf16>
    %14 = vector.extract_strided_slice %8 {offsets = [20, 0], sizes = [128, 4], strides = [1, 1]} : vector<168x4xbf16> to vector<128x4xbf16>
    %15 = vector.extract_strided_slice %8 {offsets = [36, 0], sizes = [128, 4], strides = [1, 1]} : vector<168x4xbf16> to vector<128x4xbf16>
    %16 = vector.extract_strided_slice %8 {offsets = [37, 0], sizes = [128, 4], strides = [1, 1]} : vector<168x4xbf16> to vector<128x4xbf16>
    %17 = vector.extract_strided_slice %8 {offsets = [38, 0], sizes = [128, 4], strides = [1, 1]} : vector<168x4xbf16> to vector<128x4xbf16>
    %18 = tpu.concatenate %9, %10, %11, %12, %13, %14, %15, %16, %17 in 1 : vector<128x4xbf16>, vector<128x4xbf16>, vector<128x4xbf16>, vector<128x4xbf16>, vector<128x4xbf16>, vector<128x4xbf16>, vector<128x4xbf16>, vector<128x4xbf16>, vector<128x4xbf16> -> vector<128x36xbf16>
    %c0_4 = arith.constant 0 : index
    %c0_5 = arith.constant 0 : index
    %19 = vector.load %arg4[%c0_4, %c0_5] : memref<36x128xbf16, #tpu.memory_space<vmem>>, vector<36x128xbf16>
    %cst = arith.constant dense<0.000000e+00> : vector<128x128xf32>
    %20 = tpu.matmul %18, %19, %cst {dimension_numbers = #tpu.dot_dimension_numbers<[1], [0], [0], [1], [0, 0, 1, 1], [], []>} : vector<128x36xbf16>, vector<36x128xbf16>, vector<128x128xf32> -> vector<128x128xf32>
    %c0_6 = arith.constant 0 : index
    %c0_7 = arith.constant 0 : index
    %21 = vector.load %arg5[%c0_6, %c0_7] : memref<1x128xf32, #tpu.memory_space<vmem>>, vector<1x128xf32>
    %22 = vector.broadcast %21 : vector<1x128xf32> to vector<128x128xf32>
    %23 = arith.addf %20, %22 : vector<128x128xf32>
    %cst_8 = arith.constant 0.000000e+00 : f32
    %24 = vector.broadcast %cst_8 : f32 to vector<128x128xf32>
    %25 = arith.maximumf %23, %24 : vector<128x128xf32>
    %cst_9 = arith.constant dense<0.000000e+00> : vector<1x128xf32>
    %26 = tpu.matmul %5, %25, %cst_9 {dimension_numbers = #tpu.dot_dimension_numbers<[1], [0], [0], [1], [0, 0, 1, 1], [], []>} : vector<1x128xf32>, vector<128x128xf32>, vector<1x128xf32> -> vector<1x128xf32>
    %c0_10 = arith.constant 0 : index
    %c0_11 = arith.constant 0 : index
    %27 = vector.load %arg9[%c0_10, %c0_11] : memref<2x128xf32, #tpu.memory_space<vmem>>, vector<1x128xf32>
    %28 = arith.addf %27, %26 : vector<1x128xf32>
    %c0_12 = arith.constant 0 : index
    %c0_13 = arith.constant 0 : index
    %29 = vector.load %arg9[%c0_12, %c0_13] : memref<2x128xf32, #tpu.memory_space<vmem>>, vector<1x128xf32>
    tpu.vector_store %arg9[%c0_12, %c0_13], %28 {strides = array<i32>} : memref<2x128xf32, #tpu.memory_space<vmem>>, vector<1x128xf32>,
    %c1 = arith.constant 1 : index
    %30 = arith.index_cast %4 : i32 to index
    %c0_14 = arith.constant 0 : index
    %31 = vector.load %arg2[%c1, %30, %c0_14] : memref<2x424x4xbf16, #tpu.memory_space<vmem>>, vector<1x168x4xbf16>
    %32 = vector.shape_cast %31 : vector<1x168x4xbf16> to vector<168x4xbf16>
    %33 = vector.extract_strided_slice %32 {offsets = [0, 0], sizes = [128, 4], strides = [1, 1]} : vector<168x4xbf16> to vector<128x4xbf16>
    %34 = vector.extract_strided_slice %32 {offsets = [1, 0], sizes = [128, 4], strides = [1, 1]} : vector<168x4xbf16> to vector<128x4xbf16>
    %35 = vector.extract_strided_slice %32 {offsets = [2, 0], sizes = [128, 4], strides = [1, 1]} : vector<168x4xbf16> to vector<128x4xbf16>
    %36 = vector.extract_strided_slice %32 {offsets = [18, 0], sizes = [128, 4], strides = [1, 1]} : vector<168x4xbf16> to vector<128x4xbf16>
    %37 = vector.extract_strided_slice %32 {offsets = [19, 0], sizes = [128, 4], strides = [1, 1]} : vector<168x4xbf16> to vector<128x4xbf16>
    %38 = vector.extract_strided_slice %32 {offsets = [20, 0], sizes = [128, 4], strides = [1, 1]} : vector<168x4xbf16> to vector<128x4xbf16>
    %39 = vector.extract_strided_slice %32 {offsets = [36, 0], sizes = [128, 4], strides = [1, 1]} : vector<168x4xbf16> to vector<128x4xbf16>
    %40 = vector.extract_strided_slice %32 {offsets = [37, 0], sizes = [128, 4], strides = [1, 1]} : vector<168x4xbf16> to vector<128x4xbf16>
    %41 = vector.extract_strided_slice %32 {offsets = [38, 0], sizes = [128, 4], strides = [1, 1]} : vector<168x4xbf16> to vector<128x4xbf16>
    %42 = tpu.concatenate %33, %34, %35, %36, %37, %38, %39, %40, %41 in 1 : vector<128x4xbf16>, vector<128x4xbf16>, vector<128x4xbf16>, vector<128x4xbf16>, vector<128x4xbf16>, vector<128x4xbf16>, vector<128x4xbf16>, vector<128x4xbf16>, vector<128x4xbf16> -> vector<128x36xbf16>
    %c0_15 = arith.constant 0 : index
    %c0_16 = arith.constant 0 : index
    %43 = vector.load %arg4[%c0_15, %c0_16] : memref<36x128xbf16, #tpu.memory_space<vmem>>, vector<36x128xbf16>
    %cst_17 = arith.constant dense<0.000000e+00> : vector<128x128xf32>
    %44 = tpu.matmul %42, %43, %cst_17 {dimension_numbers = #tpu.dot_dimension_numbers<[1], [0], [0], [1], [0, 0, 1, 1], [], []>} : vector<128x36xbf16>, vector<36x128xbf16>, vector<128x128xf32> -> vector<128x128xf32>
    %c0_18 = arith.constant 0 : index
    %c0_19 = arith.constant 0 : index
    %45 = vector.load %arg5[%c0_18, %c0_19] : memref<1x128xf32, #tpu.memory_space<vmem>>, vector<1x128xf32>
    %46 = vector.broadcast %45 : vector<1x128xf32> to vector<128x128xf32>
    %47 = arith.addf %44, %46 : vector<128x128xf32>
    %cst_20 = arith.constant 0.000000e+00 : f32
    %48 = vector.broadcast %cst_20 : f32 to vector<128x128xf32>
    %49 = arith.maximumf %47, %48 : vector<128x128xf32>
    %cst_21 = arith.constant dense<0.000000e+00> : vector<1x128xf32>
    %50 = tpu.matmul %5, %49, %cst_21 {dimension_numbers = #tpu.dot_dimension_numbers<[1], [0], [0], [1], [0, 0, 1, 1], [], []>} : vector<1x128xf32>, vector<128x128xf32>, vector<1x128xf32> -> vector<1x128xf32>
    %c1_22 = arith.constant 1 : index
    %c0_23 = arith.constant 0 : index
    %51 = vector.load %arg9[%c1_22, %c0_23] : memref<2x128xf32, #tpu.memory_space<vmem>>, vector<1x128xf32>
    %52 = arith.addf %51, %50 : vector<1x128xf32>
    %c1_24 = arith.constant 1 : index
    %c0_25 = arith.constant 0 : index
    %53 = vector.load %arg9[%c1_24, %c0_25] : memref<2x128xf32, #tpu.memory_space<vmem>>, vector<1x128xf32>
    tpu.vector_store %arg9[%c1_24, %c0_25], %52 {strides = array<i32>} : memref<2x128xf32, #tpu.memory_space<vmem>>, vector<1x128xf32>,
    %c2_i32 = arith.constant 2 : i32
    %54 = arith.cmpi eq, %arg1, %c2_i32 : i32
    %55 = arith.extui %54 : i1 to i32
    %c0_i32_26 = arith.constant 0 : i32
    %56 = arith.cmpi ne, %55, %c0_i32_26 : i32
    scf.if %56 {
      %c0_27 = arith.constant 0 : index
      %c0_28 = arith.constant 0 : index
      %57 = vector.load %arg9[%c0_27, %c0_28] : memref<2x128xf32, #tpu.memory_space<vmem>>, vector<2x128xf32>
      %58 = arith.truncf %57 : vector<2x128xf32> to vector<2x128xbf16>
      %c0_29 = arith.constant 0 : index
      %c0_30 = arith.constant 0 : index
      %59 = vector.load %arg6[%c0_29, %c0_30] : memref<128x128xbf16, #tpu.memory_space<vmem>>, vector<128x128xbf16>
      %cst_31 = arith.constant dense<0.000000e+00> : vector<2x128xf32>
      %60 = tpu.matmul %58, %59, %cst_31 {dimension_numbers = #tpu.dot_dimension_numbers<[1], [0], [0], [1], [0, 0, 1, 1], [], []>} : vector<2x128xbf16>, vector<128x128xbf16>, vector<2x128xf32> -> vector<2x128xf32>
      %c0_32 = arith.constant 0 : index
      %c0_33 = arith.constant 0 : index
      %61 = vector.load %arg7[%c0_32, %c0_33] : memref<1x128xf32, #tpu.memory_space<vmem>>, vector<1x128xf32>
      %62 = vector.broadcast %61 : vector<1x128xf32> to vector<2x128xf32>
      %63 = arith.addf %60, %62 : vector<2x128xf32>
      %c0_34 = arith.constant 0 : index
      %c0_35 = arith.constant 0 : index
      %c0_36 = arith.constant 0 : index
      %64 = vector.load %arg8[%c0_34, %c0_35, %c0_36] : memref<1x2x128xf32, #tpu.memory_space<vmem>>, vector<1x2x128xf32>
      %65 = vector.shape_cast %64 : vector<1x2x128xf32> to vector<2x128xf32>
      %66 = vector.shape_cast %63 : vector<2x128xf32> to vector<1x2x128xf32>
      tpu.vector_store %arg8[%c0_34, %c0_35, %c0_36], %66 {strides = array<i32>} : memref<1x2x128xf32, #tpu.memory_space<vmem>>, vector<1x2x128xf32>,
    } else {
    }
    return
  }
  func.func @transform_0(%arg0: i32, %arg1: i32) -> (i32, i32, i32) {
    %c0_i32 = arith.constant 0 : i32
    %c0_i32_0 = arith.constant 0 : i32
    %c0_i32_1 = arith.constant 0 : i32
    return %arg0, %c0_i32, %c0_i32_0 : i32, i32, i32
  }
  func.func @transform_1(%arg0: i32, %arg1: i32) -> (i32, i32) {
    %c0_i32 = arith.constant 0 : i32
    %c0_i32_0 = arith.constant 0 : i32
    return %c0_i32, %arg1 : i32, i32
  }
  func.func @transform_2(%arg0: i32, %arg1: i32) -> (i32, i32) {
    %c0_i32 = arith.constant 0 : i32
    %c0_i32_0 = arith.constant 0 : i32
    %c0_i32_1 = arith.constant 0 : i32
    return %c0_i32, %c0_i32_0 : i32, i32
  }
  func.func @transform_3(%arg0: i32, %arg1: i32) -> (i32, i32) {
    %c0_i32 = arith.constant 0 : i32
    %c0_i32_0 = arith.constant 0 : i32
    %c0_i32_1 = arith.constant 0 : i32
    return %c0_i32, %c0_i32_0 : i32, i32
  }
  func.func @transform_4(%arg0: i32, %arg1: i32) -> (i32, i32) {
    %c0_i32 = arith.constant 0 : i32
    %c0_i32_0 = arith.constant 0 : i32
    %c0_i32_1 = arith.constant 0 : i32
    return %c0_i32, %c0_i32_0 : i32, i32
  }
  func.func @transform_5(%arg0: i32, %arg1: i32) -> (i32, i32) {
    %c0_i32 = arith.constant 0 : i32
    %c0_i32_0 = arith.constant 0 : i32
    %c0_i32_1 = arith.constant 0 : i32
    return %c0_i32, %c0_i32_0 : i32, i32
  }
  func.func @transform_6(%arg0: i32, %arg1: i32) -> (i32, i32, i32) {
    %c0_i32 = arith.constant 0 : i32
    %c0_i32_0 = arith.constant 0 : i32
    %c0_i32_1 = arith.constant 0 : i32
    return %arg0, %c0_i32, %c0_i32_0 : i32, i32, i32
  }
}

</mosaic_0001>

<bundles_post_ra>
// kernel: multinet_forward.1
= control target key start
LH: loop header
LB: loop body
LE: loop exit
PB: predicated region body
PF: predicated region fallthrough
CT: control target
= control target key end

     0   :  { %11 = vsyncpa [#allocation4], 0  ;;  %s2543_s21 = smov 0   ;;  %s2545_s22 = smov 0   ;;  %s3610_s0 = inlined_call_operand.vmem [shape: bf16[2,424,4], index: 0, kind: input, shape index: {}]   ;;  %s3611_s1 = inlined_call_operand.vmem [shape: f32[1,384], index: 1, kind: input, shape index: {}]   ;;  %s3612_s2 = inlined_call_operand.vmem [shape: bf16[36,128], index: 2, kind: input, shape index: {}]   ;;  %s3613_s3 = inlined_call_operand.vmem [shape: f32[1,128], index: 3, kind: input, shape index: {}]   ;;  %s3614_s4 = inlined_call_operand.vmem [shape: bf16[128,128], index: 4, kind: input, shape index: {}]   ;;  %s3615_s5 = inlined_call_operand.vmem [shape: f32[1,128], index: 5, kind: input, shape index: {}]   ;;  %s3616_s6 = inlined_call_operand.hbm [shape: f32[1,2,128], index: 6, kind: output, shape index: {}]  }
   0x1   :  { %s2547_s23 = smov 0  }
   0x2 LB: > { %s2061_s24 = sadd.s32 4294967295, %s2492_s23   ;;  %s26_s25 = sadd.s32 1, %s2488_s22  ;;  %s2492_s23 = sphi %s2547_s23, %s17_s23   ;;  %s2488_s22 = sphi %s2545_s22, %s3619_s22   ;;  %s2484_s21 = sphi %s2543_s21, %s3618_s21  }
   0x3   : > { %p27_p0 = scmp.ge.s32.totalorder %s26_s25, 3  ;;  %p2065_p1 = scmp.ge.s32.totalorder %s2492_s23, 1 }
   0x4   : > { %p235_p2 = scmp.lt.s32.totalorder %s2492_s23, 4 }
   0x5   : > { %s3621_s25 = smov (%p27_p0, %s26_s25), 0 }
   0x6   : > { %p236_p3 = pnand %p2065_p1, %p235_p2 }
   0x7   : > { %p271_p4 = scmp.lt.s32.totalorder (!%p236_p3), %s2484_s21, 2  ;;  %p2066_p5 = scmp.ne.s32.totalorder (!%p236_p3), %s2484_s21, 0 }
   0x8   : > { %239 = sbr.rel (%p236_p3) target bundleno = 1074 (0x432), region = 44 }
   0xd   : > { %s2566_s26 = scalar_select %p271_p4, %s2484_s21, 2 }
   0xe   : > { %278 = sbr.rel (%p2066_p5) target bundleno = 21 (0x15), region = 48 }
   0xf   : > { %s273_s29 = scalar_lea.vmem %s3611_s1, %s2566_s26 }
  0x13   : > { %v2494_v0 = vmov 0.0  }
  0x14   : > { %279 = vst [vmem:[#allocation2] sm:$0x3] %v2494_v0 }
  0x15 PF: > { %s2067_s30 = sshll.u32 %s2484_s21, 7  ;;  %vm435_vm0 = vcmask 1046528   ;;  %vm350_vm1 = vsmask.f32 7424  ;;  %s2495_s12 = smov 12   ;;  %vm557_vm3 = vcmask 1045504  }
  0x16   : > { %s282_s7 = sshra.s32 %s2067_s30, 3  ;;  %s2496_s13 = smov 8   ;;  %vm495_vm2 = vsmask.f32 6400  ;;  %vm617_vm4 = vsmask.f32 5376 }
  0x17   : > { %s2068_s8 = sshll.u32 %s282_s7, 2  ;;  %s2497_s14 = smov 4   ;;  %vm679_vm5 = vcmask 1044480   ;;  %vm893_vm6 = vcmask 1041408   ;;  %vm713_vm7 = vcmask 31744   ;;  %vm730_vm8 = vcmask 64512  }
  0x18   : > { %s2577_s11 = scalar_lea.vmem %s3610_s0, %s2068_s8  ;;  %s2498_s15 = smov 16   ;;  %vm747_vm9 = vcmask 97280   ;;  %vm764_vm10 = vcmask 130048   ;;  %vm781_vm11 = vcmask 162816   ;;  %vm798_vm12 = vcmask 195584  }
  0x19   : > { %v2580_v1 = vld [vmem:[%s2577_s11 + $0x8] sm:$0xff]   ;;  %v2583_v2 = vld [vmem:[%s2577_s11 + $0x10] sm:$0xff]   ;;  %v2586_v3 = vld [vmem:[%s2577_s11] sm:$0xff]   ;;  %s2499_s16 = smov 20   ;;  %s2500_s17 = smov 24   ;;  %vm815_vm13 = vcmask 228352  }
  0x1a   : > { %v437_v4 = vrot.slane %v2580_v1, 1  ;;  %v439_v5 = vrot.slane %v2583_v2, 1  ;;  %v359_v6 = vshll.u32 %v2580_v1, 16  ;;  %v2592_v7 = vld [vmem:[%s2577_s11 + $0x18] sm:$0xff]   ;;  %v436_v8 = vrot.slane %v2586_v3, 1  ;;  %v2629_v36 = vld [vmem:[%s2577_s11 + $0x20] sm:$0xff]  }
  0x1b   : > { %v352_v9 = vshrl.u32 %v2586_v3, 16  ;;  %v354_v10 = vshll.u32 %v2586_v3, 16  ;;  %v363_v11 = vshrl.u32 %v2580_v1, 16  ;;  %v441_v14 = vrot.slane %v2592_v7, 1  ;;  %s2501_s18 = smov 28   ;;  %s2502_s19 = smov 32  }
  0x1c   : > { %v440_v12 = vsel %vm435_vm0, %v437_v4, %v439_v5  ;;  %v361_v13 = vrot.slane %v359_v6, 1  ;;  %v2601_v15 = vshll.u32 %v2583_v2, 16  ;;  %v438_v16 = vsel %vm435_vm0, %v436_v8, %v437_v4  ;;  %v2682_v8 = vld [vmem:[%s2577_s11 + $0x28] sm:$0xff]   ;;  %p2141_p6 = scmp.ne.s32.totalorder %s2484_s21, 2 }
  0x1d   : > { %479 = vrot.lane.b32.xlu0 %v440_v12, %s2495_s12  ;;  %v356_v17 = vrot.slane %v354_v10, 1  ;;  %v371_v18 = vshrl.u32 %v2583_v2, 16  ;;  %v2607_v19 = vshll.u32 %v2592_v7, 16  ;;  %453 = vrot.lane.b32.xlu1 %v438_v16, %s2496_s13  ;;  %v2612_v22 = vshrl.u32 %v2592_v7, 16 }
  0x1e   : > { %v365_v20 = vor.u32 %v363_v11, %v361_v13  ;;  %v369_v21 = vrot.slane %v2601_v15, 1  ;;  %v500_v25 = vrot.slane %v2601_v15, 2  ;;  %v496_v28 = vrot.slane %v363_v11, 1 }
  0x1f   : > { %v357_v23 = vor.u32 %v356_v17, %v352_v9  ;;  %v499_v24 = vrot.slane %v371_v18, 1  ;;  %v504_v26 = vrot.slane %v2607_v19, 2  ;;  %v503_v27 = vrot.slane %v2612_v22, 1 }
  0x20   : > { %v497_v29 = vrot.slane %v359_v6, 2  ;;  %v2623_v31 = vsel %vm435_vm0, %v439_v5, %v441_v14  ;;  %v370_v32 = vsel %vm350_vm1, %v365_v20, %v369_v21  ;;  %v559_v37 = vrot.slane %v2583_v2, 2 }
  0x21   : > { %v362_v30 = vsel %vm350_vm1, %v357_v23, %v361_v13  ;;  %455 = vrot.lane.b32.xlu1 %v440_v12, %s2496_s13  ;;  %v501_v33 = vor.u32 %v500_v25, %v499_v24  ;;  %v2626_v34 = vor.u32 %v504_v26, %v503_v27  ;;  %v561_v38 = vrot.slane %v2592_v7, 2  ;;  %v2712_v23 = vld [vmem:[%s2577_s11 + $0x30] sm:$0xff]  }
  0x22   : > { %419 = vrot.lane.b32.xlu0 %v362_v30, %s2497_s14  ;;  %v498_v35 = vor.u32 %v497_v29, %v496_v28  ;;  %v558_v39 = vrot.slane %v2580_v1, 2  ;;  %v2641_v42 = vshll.u32 %v2629_v36, 16  ;;  %v2644_v43 = vshrl.u32 %v2629_v36, 16  ;;  %v2416_v29 = vld [vmem:[%s3612_s2 + $0x10] ss:$0 sps:$4 sm:$0x33]  }
  0x23   : > { %v506_v40 = vsel %vm495_vm2, %v501_v33, %v2626_v34  ;;  %v563_v44 = vrot.slane %v2629_v36, 2  ;;  %v562_v45 = vsel %vm557_vm3, %v559_v37, %v561_v38  ;;  %v621_v47 = vrot.slane %v2612_v22, 2  ;;  %2354 = vmatprep.subr.msk.bf16.mxu0 %vm893_vm6, %v2416_v29 }
  0x24   : > { %v502_v41 = vsel %vm495_vm2, %v498_v35, %v501_v33  ;;  %v560_v46 = vsel %vm557_vm3, %v558_v39, %v559_v37  ;;  %v622_v48 = vrot.slane %v2607_v19, 3  ;;  %v625_v49 = vrot.slane %v2644_v43, 2  ;;  %v2418_v37 = vld [vmem:[%s3612_s2 + $0x8] sm:$0xff]  }
  0x25   : > { %481 = vrot.lane.b32.xlu1 %v2623_v31, %s2495_s12  ;;  %v626_v50 = vrot.slane %v2641_v42, 3  ;;  %v618_v51 = vrot.slane %v371_v18, 2  ;;  %v619_v52 = vrot.slane %v2601_v15, 3  ;;  %v2661_v53 = vsel %vm557_vm3, %v561_v38, %v563_v44 }
  0x26   : > { %421 = vrot.lane.b32.xlu0 %v370_v32, %s2497_s14  ;;  %v623_v54 = vor.u32 %v622_v48, %v621_v47  ;;  %v373_v57 = vor.u32 %v371_v18, %v369_v21  ;;  %v377_v58 = vrot.slane %v2607_v19, 1  ;;  %v680_v61 = vrot.slane %v2583_v2, 3 }
  0x27   : > { %v2663_v55 = vor.u32 %v626_v50, %v625_v49  ;;  %v620_v56 = vor.u32 %v619_v52, %v618_v51  ;;  %v681_v62 = vrot.slane %v2592_v7, 3  ;;  %v385_v63 = vrot.slane %v2641_v42, 1 }
  0x28   : > { %v378_v0 = vsel %vm350_vm1, %v373_v57, %v377_v58  ;;  %v381_v5 = vor.u32 %v2612_v22, %v377_v58  ;;  %v683_v6 = vrot.slane %v2629_v36, 3  ;;  %v443_v9 = vrot.slane %v2629_v36, 1 }
  0x29   : > { %543 = vrot.lane.b32.xlu1 %v506_v40, %s2498_s15  ;;  %v628_v59 = vsel %vm617_vm4, %v623_v54, %v2663_v55  ;;  %v624_v60 = vsel %vm617_vm4, %v620_v56, %v623_v54  ;;  %v682_v4 = vsel %vm679_vm5, %v680_v61, %v681_v62  ;;  %v391_v12 = vshll.u32 %v2682_v8, 16 }
  0x2a   : > { %541 = vrot.lane.b32.xlu0 %v502_v41, %s2498_s15  ;;  %v386_v10 = vsel %vm350_vm1, %v381_v5, %v385_v63  ;;  %v684_v11 = vsel %vm679_vm5, %v681_v62, %v683_v6  ;;  %v395_v13 = vshrl.u32 %v2682_v8, 16  ;;  %v444_v15 = vsel %vm435_vm0, %v441_v14, %v443_v9 }
  0x2b   : > { %v445_v16 = vrot.slane %v2682_v8, 1  ;;  %v507_v17 = vrot.slane %v2644_v43, 1  ;;  %v508_v18 = vrot.slane %v2641_v42, 2  ;;  %v512_v20 = vrot.slane %v391_v12, 2  ;;  %v2419_v42 = vld [vmem:[%s3612_s2] sm:$0xff]  }
  0x2c   : > { %v511_v19 = vrot.slane %v395_v13, 1  ;;  %v565_v24 = vrot.slane %v2682_v8, 2  ;;  %v2723_v27 = vshll.u32 %v2712_v23, 16  ;;  %v2726_v28 = vshrl.u32 %v2712_v23, 16 }
  0x2d   : > { %577 = vrot.lane.b32.xlu1 %v562_v45, %s2499_s16  ;;  %v2707_v21 = vsel %vm435_vm0, %v443_v9, %v445_v16  ;;  %v509_v22 = vor.u32 %v508_v18, %v507_v17  ;;  %v629_v32 = vrot.slane %v395_v13, 2  ;;  %v630_v33 = vrot.slane %v391_v12, 3 }
  0x2e   : > { %575 = vrot.lane.b32.xlu0 %v560_v46, %s2499_s16  ;;  %v2709_v14 = vor.u32 %v512_v20, %v511_v19  ;;  %v566_v30 = vsel %vm557_vm3, %v563_v44, %v565_v24  ;;  %v634_v35 = vrot.slane %v2723_v27, 3  ;;  %v895_v38 = vsel %vm893_vm6, %v2416_v29, 0 }
  0x2f   : > { %v510_v26 = vsel %vm495_vm2, %v2626_v34, %v509_v22  ;;  %v633_v34 = vrot.slane %v2726_v28, 2  ;;  %2221 = vmatpush3.bf16.msra.mxu0 %v895_v38  ;;  %v631_v40 = vor.u32 %v630_v33, %v629_v32  ;;  %v389_v44 = vor.u32 %v2644_v43, %v385_v63  ;;  %v304_v33 = vld [vmem:[%s2577_s11 + $0x48] sm:$0xf] }
  0x30   : > { %v514_v25 = vsel %vm495_vm2, %v509_v22, %v2709_v14  ;;  %2222 = vmatprep.subr.bf16.mxu0 %v2418_v37  ;;  %v393_v47 = vrot.slane %v391_v12, 1  ;;  %v685_v48 = vrot.slane %v2682_v8, 3  ;;  %v401_v49 = vrot.slane %v2723_v27, 1 }
  0x31   : > { %603 = vrot.lane.b32.xlu1 %v2661_v53, %s2500_s17  ;;  %v2750_v41 = vor.u32 %v634_v35, %v633_v34  ;;  %v632_v46 = vsel %vm617_vm4, %v2663_v55, %v631_v40  ;;  %v687_v52 = vrot.slane %v2712_v23, 3  ;;  %v447_v54 = vrot.slane %v2712_v23, 1 }
  0x32   : > { %601 = vrot.lane.b32.xlu0 %v562_v45, %s2500_s17  ;;  %v394_v50 = vsel %vm350_vm1, %v389_v44, %v393_v47  ;;  %v686_v43 = vsel %vm679_vm5, %v683_v6, %v685_v48  ;;  %v397_v51 = vor.u32 %v395_v13, %v393_v47  ;;  %v516_v61 = vrot.slane %v2723_v27, 2 }
  0x33   : > { %2223 = vmatpush3.bf16.msra.mxu0 %v2418_v37  ;;  %v636_v45 = vsel %vm617_vm4, %v631_v40, %v2750_v41  ;;  %v688_v56 = vsel %vm679_vm5, %v685_v48, %v687_v52  ;;  %v448_v58 = vsel %vm435_vm0, %v445_v16, %v447_v54  ;;  %vm832_vm14 = vcmask 261120  }
  0x34   : > { %2224 = vmatprep.subr.bf16.mxu0 %v2419_v42  ;;  %v402_v55 = vsel %vm350_vm1, %v397_v51, %v401_v49  ;;  %vm876_vm15 = vcmask 293888  }
  0x35   : > { %665 = vrot.lane.b32.xlu1 %v628_v59, %s2501_s18 }
  0x36   : > { %663 = vrot.lane.b32.xlu0 %v624_v60, %s2501_s18  ;;  %v515_v60 = vrot.slane %v2726_v28, 1 }
  0x37   : > { %2225 = vmatpush3.bf16.msra.mxu0 %v2419_v42 }
  0x38   : > { %v517_v6 = vor.u32 %v516_v61, %v515_v60 }
  0x39   : > { %423 = vrot.lane.b32.xlu1 %v378_v0, %s2497_s14  ;;  %v302_v0 = vld [vmem:[%s2577_s11 + $0x40] sm:$0xf] }
  0x3a   : > { %697 = vrot.lane.b32.xlu0 %v682_v4, %s2502_s19  ;;  %v303_v4 = vld [vmem:[%s2577_s11 + $0x44] sm:$0xf]  ;;  %v518_v13 = vsel %vm495_vm2, %v2709_v14, %v517_v6 }
  0x3d   : > { %425 = vrot.lane.b32.xlu1 %v386_v10, %s2497_s14  ;;  %v2800_v10 = vcombine.low %v302_v0, %v303_v4 }
  0x3e   : > { %699 = vrot.lane.b32.xlu0 %v684_v11, %s2502_s19 }
  0x3f   : > { %v527_v16 = vshll.u32 %v2800_v10, 16  ;;  %v2817_v19 = vrot.slane %v2800_v10, 2  ;;  %v691_v38 = vrot.slane %v2800_v10, 3 }
  0x41   : > { %459 = vrot.lane.b32.xlu1 %v444_v15, %s2496_s13  ;;  %v642_v22 = vrot.slane %v527_v16, 3  ;;  %v529_v48 = vrot.slane %v527_v16, 2  ;;  %v2870_v16 = vld [vmem:[%s2577_s11 + $0xdc] sm:$0xff]  }
  0x42   : > { %457 = vrot.lane.b32.xlu0 %v2623_v31, %s2496_s13  ;;  %v567_v31 = vrot.slane %v2712_v23, 2 }
  0x44   : > { %v568_v39 = vsel %vm557_vm3, %v565_v24, %v567_v31 }
  0x45   : > { %485 = vrot.lane.b32.xlu1 %v2707_v21, %s2495_s12 }
  0x46   : > { %483 = vrot.lane.b32.xlu0 %v444_v15, %s2495_s12  ;;  %v524_v15 = vshrl.u32 %v2800_v10, 16 }
  0x48   : > { %v526_v47 = vrot.slane %v524_v15, 1 }
  0x49   : > { %547 = vrot.lane.b32.xlu1 %v514_v25, %s2498_s15  ;;  %v2077_v25 = vcombine.low %v302_v0, %v302_v0 }
  0x4a   : > { %545 = vrot.lane.b32.xlu0 %v510_v26, %s2498_s15  ;;  %v405_v26 = vor.u32 %v2726_v28, %v401_v49 }
  0x4b   : > { %v415_v32 = vshll.u32 %v2077_v25, 16  ;;  %v451_v40 = vrot.slane %v2077_v25, 1 }
  0x4d   : > { %581 = vrot.lane.b32.xlu1 %v566_v30, %s2499_s16  ;;  %v417_v37 = vrot.slane %v415_v32, 1 }
  0x4e   : > { %579 = vrot.lane.b32.xlu0 %v2661_v53, %s2499_s16  ;;  %v2772_v53 = vld [vmem:[%s2577_s11 + $0x38] sm:$0xff]  }
  0x4f   : > { %v407_v36 = vshll.u32 %v2772_v53, 16  ;;  %v411_v57 = vshrl.u32 %v2772_v53, 16  ;;  %v2787_v59 = vrot.slane %v2772_v53, 1  ;;  %v569_v11 = vrot.slane %v2772_v53, 2 }
  0x50   : > { %v689_v29 = vrot.slane %v2772_v53, 3 }
  0x51   : > { %607 = vrot.lane.b32.xlu1 %v568_v39, %s2500_s17  ;;  %v519_v62 = vrot.slane %v411_v57, 1  ;;  %v520_v63 = vrot.slane %v407_v36, 2  ;;  %v450_v5 = vsel %vm435_vm0, %v447_v54, %v2787_v59  ;;  %v570_v17 = vsel %vm557_vm3, %v567_v31, %v569_v11 }
  0x52   : > { %605 = vrot.lane.b32.xlu0 %v566_v30, %s2500_s17  ;;  %v637_v18 = vrot.slane %v411_v57, 2  ;;  %v638_v20 = vrot.slane %v407_v36, 3  ;;  %v2823_v14 = vsel %vm557_vm3, %v569_v11, %v2817_v19  ;;  %v409_v27 = vrot.slane %v407_v36, 1 }
  0x53   : > { %v2798_v9 = vor.u32 %v520_v63, %v519_v62  ;;  %v690_v35 = vsel %vm679_vm5, %v687_v52, %v689_v29  ;;  %v692_v42 = vsel %vm679_vm5, %v689_v29, %v691_v38  ;;  %v452_v49 = vsel %vm435_vm0, %v2787_v59, %v451_v40  ;;  %v305_v52 = vld [vmem:[%s2577_s11 + $0x4c] sm:$0xf] }
  0x54   : > { %v639_v24 = vor.u32 %v638_v20, %v637_v18  ;;  %v410_v34 = vsel %vm350_vm1, %v405_v26, %v409_v27  ;;  %v413_v28 = vor.u32 %v411_v57, %v409_v27  ;;  %v530_v54 = vor.u32 %v529_v48, %v526_v47 }
  0x55   : > { %669 = vrot.lane.b32.xlu1 %v636_v45, %s2501_s18  ;;  %v522_v12 = vsel %vm495_vm2, %v517_v6, %v2798_v9  ;;  %v1158_v26 = vshll.u32 %v2870_v16, 16  ;;  %v1235_v48 = vrot.slane %v2870_v16, 1 }
  0x56   : > { %667 = vrot.lane.b32.xlu0 %v632_v46, %s2501_s18  ;;  %v640_v31 = vsel %vm617_vm4, %v2750_v41, %v639_v24  ;;  %v418_v41 = vsel %vm350_vm1, %v413_v28, %v417_v37  ;;  %v475_v46 = vrot.slane %v2800_v10, 1  ;;  %v531_v60 = vsel %vm495_vm2, %v2798_v9, %v530_v54 }
  0x58   : > { %v476_v36 = vsel %vm435_vm0, %v2787_v59, %v475_v46 }
  0x59   : > { %427 = vrot.lane.b32.xlu1 %v394_v50, %s2497_s14 }
  0x5a   : > { %701 = vrot.lane.b32.xlu0 %v686_v43, %s2502_s19 }
  0x5d   : > { %429 = vrot.lane.b32.xlu1 %v402_v55, %s2497_s14  ;;  %v2412_v55 = vld [vmem:[%s2577_s11 + $0x50] ss:$0 sps:$4 sm:$0xff]  }
  0x5e   : > { %703 = vrot.lane.b32.xlu0 %v688_v56, %s2502_s19  ;;  %v655_v62 = vshrl.u32 %v2412_v55, 16  ;;  %v599_v11 = vrot.slane %v2412_v55, 2 }
  0x61   : > { %463 = vrot.lane.b32.xlu1 %v448_v58, %s2496_s13 }
  0x62   : > { %461 = vrot.lane.b32.xlu0 %v2707_v21, %s2496_s13  ;;  %v641_v21 = vrot.slane %v524_v15, 2 }
  0x64   : > { %v2825_v23 = vor.u32 %v642_v22, %v641_v21  ;;  %v2882_v21 = vld [vmem:[%s2577_s11 + $0xe4] sm:$0xff]  }
  0x65   : > { %489 = vrot.lane.b32.xlu1 %v450_v5, %s2495_s12 }
  0x66   : > { %487 = vrot.lane.b32.xlu0 %v448_v58, %s2495_s12  ;;  %v644_v30 = vsel %vm617_vm4, %v639_v24, %v2825_v23  ;;  %v2080_v58 = vcombine.low %v304_v33, %v305_v52 }
  0x68   : > { %v646_v0 = vshrl.u32 %v2080_v58, 16  ;;  %v649_v4 = vshll.u32 %v2080_v58, 16  ;;  %v597_v6 = vrot.slane %v2080_v58, 2 }
  0x69   : > { %551 = vrot.lane.b32.xlu1 %v522_v12, %s2498_s15 }
  0x6a   : > { %549 = vrot.lane.b32.xlu0 %v518_v13, %s2498_s15  ;;  %v648_v9 = vrot.slane %v646_v0, 2  ;;  %v651_v12 = vrot.slane %v649_v4, 3  ;;  %v657_v13 = vrot.slane %v655_v62, 2  ;;  %v600_v18 = vsel %vm557_vm3, %v597_v6, %v599_v11 }
  0x6b   : > { %v598_v20 = vsel %vm557_vm3, %v2817_v19, %v597_v6  ;;  %v1294_v0 = vrot.slane %v1158_v26, 2  ;;  %v2948_v6 = vld [vmem:[%s2577_s11 + $0xf4] sm:$0xff]  }
  0x6c   : > { %v652_v24 = vor.u32 %v651_v12, %v648_v9 }
  0x6d   : > { %585 = vrot.lane.b32.xlu1 %v570_v17, %s2499_s16 }
  0x6e   : > { %583 = vrot.lane.b32.xlu0 %v568_v39, %s2499_s16  ;;  %v2079_v39 = vcombine.low %v304_v33, %v304_v33 }
  0x70   : > { %v533_v44 = vshrl.u32 %v2079_v39, 16  ;;  %v536_v45 = vshll.u32 %v2079_v39, 16  ;;  %v477_v50 = vrot.slane %v2079_v39, 1  ;;  %v573_v61 = vrot.slane %v2079_v39, 2 }
  0x71   : > { %611 = vrot.lane.b32.xlu1 %v2823_v14, %s2500_s17 }
  0x72   : > { %609 = vrot.lane.b32.xlu0 %v570_v17, %s2500_s17  ;;  %v535_v43 = vrot.slane %v533_v44, 1  ;;  %v538_v51 = vrot.slane %v536_v45, 2  ;;  %v478_v56 = vsel %vm435_vm0, %v475_v46, %v477_v50  ;;  %v574_v59 = vsel %vm557_vm3, %v2817_v19, %v573_v61  ;;  %v2873_v17 = vld [vmem:[%s2577_s11 + $0xd4] sm:$0xff]  }
  0x73   : > { %v1153_v27 = vshll.u32 %v2873_v17, 16  ;;  %v1162_v19 = vshrl.u32 %v2870_v16, 16  ;;  %v1151_v32 = vshrl.u32 %v2873_v17, 16  ;;  %v1234_v10 = vrot.slane %v2873_v17, 1 }
  0x74   : > { %v539_v57 = vor.u32 %v538_v51, %v535_v43 }
  0x75   : > { %673 = vrot.lane.b32.xlu1 %v644_v30, %s2501_s18  ;;  %v693_v30 = vrot.slane %v2080_v58, 3  ;;  %v1155_v28 = vrot.slane %v1153_v27, 1  ;;  %v2429_v27 = vld [vmem:[%s3612_s2 + $0x10] ss:$0 sps:$4 sm:$0x33]  }
  0x76   : > { %671 = vrot.lane.b32.xlu0 %v640_v31, %s2501_s18  ;;  %v540_v63 = vsel %vm495_vm2, %v530_v54, %v539_v57  ;;  %v2894_v31 = vshll.u32 %v2882_v21, 16  ;;  %2355 = vmatprep.subr.msk.bf16.mxu0 %vm893_vm6, %v2429_v27 }
  0x77   : > { %v1156_v45 = vor.u32 %v1155_v28, %v1151_v32 }
  0x78   : > { %v1168_v44 = vrot.slane %v2894_v31, 1 }
  0x79   : > { %431 = vrot.lane.b32.xlu1 %v410_v34, %s2497_s14  ;;  %v653_v34 = vsel %vm617_vm4, %v2825_v23, %v652_v24  ;;  %v2910_v23 = vld [vmem:[%s2577_s11 + $0xec] sm:$0xff]  }
  0x7a   : > { %705 = vrot.lane.b32.xlu0 %v690_v35, %s2502_s19  ;;  %v1160_v35 = vrot.slane %v1158_v26, 1  ;;  %v2927_v51 = vshll.u32 %v2910_v23, 16  ;;  %v2930_v52 = vshrl.u32 %v2910_v23, 16  ;;  %v1239_v57 = vrot.slane %v2910_v23, 1 }
  0x7b   : > { %v1354_v26 = vrot.slane %v2870_v16, 2 }
  0x7c   : > { %v1161_v43 = vsel %vm350_vm1, %v1156_v45, %v1160_v35  ;;  %v1300_v61 = vrot.slane %v2930_v52, 1  ;;  %v1301_v62 = vrot.slane %v2927_v51, 2 }
  0x7d   : > { %433 = vrot.lane.b32.xlu1 %v418_v41, %s2497_s14  ;;  %v694_v41 = vsel %vm679_vm5, %v691_v38, %v693_v30  ;;  %v2920_v38 = vshrl.u32 %v2882_v21, 16 }
  0x7e   : > { %707 = vrot.lane.b32.xlu0 %v692_v42, %s2502_s19  ;;  %v1164_v42 = vor.u32 %v1162_v19, %v1160_v35  ;;  %v2955_v12 = vor.u32 %v1301_v62, %v1300_v61 }
  0x7f   : > { %v1296_v58 = vrot.slane %v2920_v38, 1 }
  0x80   : > { %v1169_v50 = vsel %vm350_vm1, %v1164_v42, %v1168_v44 }
  0x81   : > { %467 = vrot.lane.b32.xlu1 %v452_v49, %s2496_s13  ;;  %v1237_v49 = vrot.slane %v2882_v21, 1 }
  0x82   : > { %465 = vrot.lane.b32.xlu0 %v450_v5, %s2496_s13  ;;  %v658_v5 = vshll.u32 %v2412_v55, 16 }
  0x83   : > { %v2953_v11 = vsel %vm435_vm0, %v1237_v49, %v1239_v57 }
  0x84   : > { %v660_v15 = vrot.slane %v658_v5, 3 }
  0x85   : > { %493 = vrot.lane.b32.xlu1 %v478_v56, %s2495_s12  ;;  %v1238_v56 = vsel %vm435_vm0, %v1235_v48, %v1237_v49  ;;  %v1413_v49 = vrot.slane %v2920_v38, 2 }
  0x86   : > { %491 = vrot.lane.b32.xlu0 %v476_v36, %s2495_s12  ;;  %v661_v25 = vor.u32 %v660_v15, %v657_v13  ;;  %v1236_v36 = vsel %vm435_vm0, %v1234_v10, %v1235_v48  ;;  %v1414_v10 = vrot.slane %v2894_v31, 3 }
  0x88   : > { %v662_v33 = vsel %vm617_vm4, %v652_v24, %v661_v25  ;;  %v1357_v24 = vrot.slane %v2910_v23, 2 }
  0x89   : > { %555 = vrot.lane.b32.xlu1 %v540_v63, %s2498_s15  ;;  %v1293_v63 = vrot.slane %v1162_v19, 1  ;;  %v2979_v19 = vshll.u32 %v2948_v6, 16 }
  0x8a   : > { %553 = vrot.lane.b32.xlu0 %v531_v60, %s2498_s15  ;;  %v1297_v60 = vrot.slane %v2894_v31, 2  ;;  %v2431_v31 = vld [vmem:[%s3612_s2] sm:$0xff]  }
  0x8b   : > { %v1295_v13 = vor.u32 %v1294_v0, %v1293_v63  ;;  %v1421_v48 = vrot.slane %v2979_v19, 3 }
  0x8c   : > { %v1298_v9 = vor.u32 %v1297_v60, %v1296_v58 }
  0x8d   : > { %589 = vrot.lane.b32.xlu1 %v574_v59, %s2499_s16 }
  0x8e   : > { %587 = vrot.lane.b32.xlu0 %v2823_v14, %s2499_s16  ;;  %v695_v14 = vrot.slane %v2412_v55, 3 }
  0x8f   : > { %v2884_v22 = vpop.permute.xlu0 %479  ;;  %v2888_v29 = vpop.permute.xlu1 %453 }
  0x90   : > { %v696_v40 = vsel %vm679_vm5, %v693_v30, %v695_v14  ;;  %v1303_v30 = vsel %vm495_vm2, %v1298_v9, %v2955_v12  ;;  %v1299_v14 = vsel %vm495_vm2, %v1295_v13, %v1298_v9  ;;  %v2430_v9 = vld [vmem:[%s3612_s2 + $0x8] sm:$0xff]   ;;  %v1172_v13 = vor.u32 %v2920_v38, %v1168_v44 }
  0x91   : > { %615 = vrot.lane.b32.xlu1 %v600_v18, %s2500_s17  ;;  %v1184_v44 = vrot.slane %v2979_v19, 1 }
  0x92   : > { %613 = vrot.lane.b32.xlu0 %v598_v20, %s2500_s17  ;;  %v1355_v20 = vrot.slane %v2882_v21, 2 }
  0x93   : > { %v2900_v37 = vpop.permute.xlu1 %455 }
  0x94   : > { %v420_v39 = vpop.permute.xlu0 %419  ;;  %v1358_v35 = vsel %vm557_vm3, %v1355_v20, %v1357_v24 }
  0x95   : > { %677 = vrot.lane.b32.xlu1 %v662_v33, %s2501_s18  ;;  %v715_v59 = vsel %vm713_vm7, %v2586_v3, %v420_v39  ;;  %v1359_v39 = vrot.slane %v2948_v6, 2 }
  0x96   : > { %675 = vrot.lane.b32.xlu0 %v653_v34, %s2501_s18  ;;  %v732_v25 = vsel %vm730_vm8, %v715_v59, %v2888_v29  ;;  %v1679_v59 = vsel %vm893_vm6, %v2429_v27, 0 }
  0x97   : > { %v2912_v46 = vpop.permute.xlu1 %481  ;;  %v749_v32 = vsel %vm747_vm9, %v732_v25, %v2884_v22  ;;  %v1417_v22 = vrot.slane %v2927_v51, 3  ;;  %v3012_v58 = vsel %vm557_vm3, %v1357_v24, %v1359_v39  ;;  %v1475_v24 = vrot.slane %v2910_v23, 3 }
  0x98   : > { %v422_v47 = vpop.permute.xlu0 %421 }
  0x99   : > { %711 = vrot.lane.b32.xlu1 %v696_v40, %s2502_s19  ;;  %v717_v15 = vsel %vm713_vm7, %v2580_v1, %v422_v47  ;;  %v2971_v1 = vshrl.u32 %v2948_v6, 16  ;;  %v1416_v40 = vrot.slane %v2930_v52, 2 }
  0x9a   : > { %709 = vrot.lane.b32.xlu0 %v694_v41, %s2502_s19  ;;  %v734_v29 = vsel %vm730_vm8, %v717_v15, %v2900_v37  ;;  %v1356_v37 = vsel %vm557_vm3, %v1354_v26, %v1355_v20  ;;  %v1176_v15 = vrot.slane %v2927_v51, 1  ;;  %v1474_v20 = vrot.slane %v2882_v21, 3 }
  0x9b   : > { %v2932_v54 = vpop.permute.xlu1 %543  ;;  %v751_v41 = vsel %vm747_vm9, %v734_v29, %v2912_v46  ;;  %v1420_v45 = vrot.slane %v2971_v1, 2  ;;  %v1418_v61 = vor.u32 %v1417_v22, %v1416_v40  ;;  %v1477_v29 = vrot.slane %v2948_v6, 3 }
  0x9c   : > { %v542_v55 = vpop.permute.xlu0 %541  ;;  %v1177_v38 = vsel %vm350_vm1, %v1172_v13, %v1176_v15  ;;  %v1476_v51 = vsel %vm679_vm5, %v1474_v20, %v1475_v24  ;;  %v1180_v27 = vor.u32 %v2930_v52, %v1176_v15  ;;  %v1304_v22 = vrot.slane %v2971_v1, 1 }
  0x9d   : > { %1220 = vrot.lane.b32.xlu1 %v1169_v50, %s2497_s14  ;;  %v766_v28 = vsel %vm764_vm10, %v749_v32, %v542_v55  ;;  %v768_v55 = vsel %vm764_vm10, %v751_v41, %v2932_v54  ;;  %v3016_v62 = vor.u32 %v1421_v48, %v1420_v45  ;;  %v1415_v54 = vor.u32 %v1414_v10, %v1413_v49 }
  0x9e   : > { %1218 = vrot.lane.b32.xlu0 %v1161_v43, %s2497_s14  ;;  %v1478_v52 = vsel %vm679_vm5, %v1475_v24, %v1477_v29  ;;  %v1305_v45 = vrot.slane %v2979_v19, 2 }
  0x9f   : > { %v578_v4 = vpop.permute.xlu1 %577 }
  0xa0   : > { %v576_v5 = vpop.permute.xlu0 %575 }
  0xa1   : > { %1253 = vrot.lane.b32.xlu1 %v1238_v56, %s2496_s13  ;;  %v783_v42 = vsel %vm781_vm11, %v766_v28, %v576_v5 }
  0xa2   : > { %1251 = vrot.lane.b32.xlu0 %v1236_v36, %s2496_s13  ;;  %v785_v36 = vsel %vm781_vm11, %v768_v55, %v578_v4 }
  0xa3   : > { %v604_v18 = vpop.permute.xlu1 %603 }
  0xa4   : > { %v602_v3 = vpop.permute.xlu0 %601  ;;  %v802_v60 = vsel %vm798_vm12, %v785_v36, %v604_v18  ;;  %v1423_v18 = vsel %vm617_vm4, %v1418_v61, %v3016_v62 }
  0xa5   : > { %1279 = vrot.lane.b32.xlu1 %v2953_v11, %s2495_s12  ;;  %v800_v47 = vsel %vm798_vm12, %v783_v42, %v602_v3  ;;  %v1419_v3 = vsel %vm617_vm4, %v1415_v54, %v1418_v61 }
  0xa6   : > { %1277 = vrot.lane.b32.xlu0 %v1238_v56, %s2495_s12 }
  0xa7   : > { %v666_v33 = vpop.permute.xlu1 %665 }
  0xa8   : > { %v664_v34 = vpop.permute.xlu0 %663  ;;  %v819_v63 = vsel %vm815_vm13, %v802_v60, %v666_v33  ;;  %v1241_v33 = vrot.slane %v2948_v6, 1 }
  0xa9   : > { %1340 = vrot.lane.b32.xlu1 %v1303_v30, %s2498_s15  ;;  %v817_v46 = vsel %vm815_vm13, %v800_v47, %v664_v34  ;;  %v3052_v30 = vld [vmem:[%s2577_s11 + $0xfc] sm:$0xff]   ;;  %v1185_v34 = vsel %vm350_vm1, %v1180_v27, %v1184_v44 }
  0xaa   : > { %1338 = vrot.lane.b32.xlu0 %v1299_v14, %s2498_s15  ;;  %v3067_v28 = vshrl.u32 %v3052_v30, 16  ;;  %v1242_v41 = vsel %vm435_vm0, %v1239_v57, %v1241_v33  ;;  %v1243_v42 = vrot.slane %v3052_v30, 1 }
  0xab   : > { %v3001_v50 = vpop.permute.xlu1 %423 }
  0xac   : > { %v698_v43 = vpop.permute.xlu0 %697  ;;  %v1308_v47 = vrot.slane %v3067_v28, 1  ;;  %v3088_v57 = vsel %vm435_vm0, %v1241_v33, %v1243_v42  ;;  %v719_v60 = vsel %vm713_vm7, %v2583_v2, %v3001_v50  ;;  %v1424_v15 = vrot.slane %v3067_v28, 2 }
  0xad   : > { %v834_v56 = vsel %vm832_vm14, %v817_v46, %v698_v43  ;;  %1373 = vrot.lane.b32.xlu1 %v1358_v35, %s2499_s16  ;;  %v3083_v46 = vld [vmem:[%s2577_s11 + $0x104] sm:$0xff]   ;;  %v1306_v43 = vor.u32 %v1305_v45, %v1304_v22 }
  0xae   : > { %1371 = vrot.lane.b32.xlu0 %v1356_v37, %s2499_s16  ;;  %2226 = vmatprep.mubr.msk.bf16.mxu0 %vm876_vm15, %v834_v56  ;;  %v3100_v61 = vshll.u32 %v3083_v46, 16  ;;  %v3108_v2 = vshrl.u32 %v3083_v46, 16  ;;  %v1363_v13 = vrot.slane %v3083_v46, 2 }
  0xaf   : > { %v3019_v0 = vpop.permute.xlu1 %425 }
  0xb0   : > { %v700_v4 = vpop.permute.xlu0 %699 }
  0xb1   : > { %v836_v5 = vsel %vm832_vm14, %v819_v63, %v700_v4  ;;  %1399 = vrot.lane.b32.xlu1 %v3012_v58, %s2500_s17  ;;  %v1307_v4 = vsel %vm495_vm2, %v2955_v12, %v1306_v43 }
  0xb2   : > { %1397 = vrot.lane.b32.xlu0 %v1358_v35, %s2500_s17  ;;  %2227 = vmatmul.mubr.msk.bf16.vlgmr.msra.gmra.mxu0 %vm876_vm15, %v836_v5  ;;  %v3064_v35 = vshll.u32 %v3052_v30, 16 }
  0xb3   : > { %v3039_v25 = vpop.permute.xlu1 %459  ;;  %2278 = vmatpush3.bf16.msra.mxu0 %v1679_v59 }
  0xb4   : > { %v458_v26 = vpop.permute.xlu0 %457  ;;  %2279 = vmatprep.subr.bf16.mxu0 %v2430_v9  ;;  %v1309_v48 = vrot.slane %v3064_v35, 2  ;;  %v1425_v20 = vrot.slane %v3064_v35, 3 }
  0xb5   : > { %1460 = vrot.lane.b32.xlu1 %v1423_v18, %s2501_s18  ;;  %v736_v54 = vsel %vm730_vm8, %v719_v60, %v458_v26  ;;  %v721_v18 = vsel %vm713_vm7, %v2592_v7, %v3019_v0  ;;  %v1429_v7 = vrot.slane %v3100_v61, 3 }
  0xb6   : > { %1458 = vrot.lane.b32.xlu0 %v1419_v3, %s2501_s18  ;;  %v3090_v55 = vor.u32 %v1309_v48, %v1308_v47  ;;  %v738_v24 = vsel %vm730_vm8, %v721_v18, %v3039_v25  ;;  %v1192_v48 = vrot.slane %v3064_v35, 1  ;;  %v1481_v35 = vrot.slane %v3083_v46, 3 }
  0xb7   : > { %v486_v14 = vpop.permute.xlu1 %485  ;;  %2280 = vmatpush3.bf16.msra.mxu0 %v2430_v9 }
  0xb8   : > { %v484_v32 = vpop.permute.xlu0 %483  ;;  %2281 = vmatprep.subr.bf16.mxu0 %v2431_v31  ;;  %v1311_v63 = vsel %vm495_vm2, %v1306_v43, %v3090_v55  ;;  %v755_v0 = vsel %vm747_vm9, %v738_v24, %v486_v14  ;;  %v2111_v24 = vld [vmem:[%s2577_s11 + $0x114] sm:$0xf] }
  0xb9   : > { %1222 = vrot.lane.b32.xlu1 %v1177_v38, %s2497_s14  ;;  %v753_v50 = vsel %vm747_vm9, %v736_v54, %v484_v32 }
  0xba   : > { %1491 = vrot.lane.b32.xlu0 %v1476_v51, %s2502_s19 }
  0xbb   : > { %v548_v37 = vpop.permute.xlu1 %547  ;;  %2282 = vmatpush3.bf16.msra.mxu0 %v2431_v31  ;;  %v1428_v31 = vrot.slane %v3108_v2, 2 }
  0xbc   : > { %v546_v40 = vpop.permute.xlu0 %545 }
  0xbd   : > { %1224 = vrot.lane.b32.xlu1 %v1185_v34, %s2497_s14  ;;  %v770_v9 = vsel %vm764_vm10, %v753_v50, %v546_v40  ;;  %v1426_v34 = vor.u32 %v1425_v20, %v1424_v15 }
  0xbe   : > { %1493 = vrot.lane.b32.xlu0 %v1478_v52, %s2502_s19  ;;  %v3146_v52 = vor.u32 %v1429_v7, %v1428_v31 }
  0xbf   : > { %v582_v49 = vpop.permute.xlu1 %581  ;;  %v1427_v47 = vsel %vm617_vm4, %v3016_v62, %v1426_v34  ;;  %v1196_v62 = vor.u32 %v3067_v28, %v1192_v48 }
  0xc0   : > { %v580_v10 = vpop.permute.xlu0 %579  ;;  %v1431_v45 = vsel %vm617_vm4, %v1426_v34, %v3146_v52 }
  0xc1   : > { %1257 = vrot.lane.b32.xlu1 %v1242_v41, %s2496_s13  ;;  %v787_v3 = vsel %vm781_vm11, %v770_v9, %v580_v10 }
  0xc2   : > { %1255 = vrot.lane.b32.xlu0 %v2953_v11, %s2496_s13  ;;  %v1361_v11 = vrot.slane %v3052_v30, 2 }
  0xc3   : > { %v608_v56 = vpop.permute.xlu1 %607 }
  0xc4   : > { %v606_v36 = vpop.permute.xlu0 %605  ;;  %v1362_v12 = vsel %vm557_vm3, %v1359_v39, %v1361_v11  ;;  %v772_v39 = vsel %vm764_vm10, %v755_v0, %v548_v37  ;;  %v3144_v14 = vsel %vm557_vm3, %v1361_v11, %v1363_v13  ;;  %v1245_v11 = vrot.slane %v3083_v46, 1 }
  0xc5   : > { %1283 = vrot.lane.b32.xlu1 %v3088_v57, %s2495_s12  ;;  %v804_v26 = vsel %vm798_vm12, %v787_v3, %v606_v36  ;;  %v789_v33 = vsel %vm781_vm11, %v772_v39, %v582_v49  ;;  %v1479_v49 = vrot.slane %v3052_v30, 3 }
  0xc6   : > { %1281 = vrot.lane.b32.xlu0 %v1242_v41, %s2495_s12  ;;  %v806_v25 = vsel %vm798_vm12, %v789_v33, %v608_v56  ;;  %v3177_v56 = vld [vmem:[%s2577_s11 + $0x10c] sm:$0xff]   ;;  %v1246_v9 = vsel %vm435_vm0, %v1243_v42, %v1245_v11 }
  0xc7   : > { %v670_v5 = vpop.permute.xlu1 %669  ;;  %v3189_v28 = vshll.u32 %v3177_v56, 16  ;;  %v3202_v15 = vrot.slane %v3177_v56, 1  ;;  %v1365_v39 = vrot.slane %v3177_v56, 2 }
  0xc8   : > { %v668_v59 = vpop.permute.xlu0 %667  ;;  %v823_v37 = vsel %vm815_vm13, %v806_v25, %v670_v5  ;;  %v1312_v5 = vrot.slane %v3108_v2, 1 }
  0xc9   : > { %1344 = vrot.lane.b32.xlu1 %v1311_v63, %s2498_s15  ;;  %v821_v38 = vsel %vm815_vm13, %v804_v26, %v668_v59  ;;  %v3192_v63 = vshrl.u32 %v3177_v56, 16  ;;  %v1313_v59 = vrot.slane %v3100_v61, 2  ;;  %v1317_v3 = vrot.slane %v3189_v28, 2  ;;  %v2112_v26 = vld [vmem:[%s2577_s11 + $0x118] sm:$0xf] }
  0xca   : > { %1342 = vrot.lane.b32.xlu0 %v1307_v4, %s2498_s15  ;;  %v3213_v42 = vsel %vm435_vm0, %v1245_v11, %v3202_v15  ;;  %v3217_v0 = vcombine.low %v2111_v24, %v2112_v26  ;;  %v1208_v26 = vrot.slane %v3189_v28, 1 }
  0xcb   : > { %v3131_v51 = vpop.permute.xlu1 %427  ;;  %v1316_v18 = vrot.slane %v3192_v63, 1  ;;  %v1314_v31 = vor.u32 %v1313_v59, %v1312_v5 }
  0xcc   : > { %v702_v27 = vpop.permute.xlu0 %701 }
  0xcd   : > { %v838_v32 = vsel %vm832_vm14, %v821_v38, %v702_v27  ;;  %1377 = vrot.lane.b32.xlu1 %v1362_v12, %s2499_s16  ;;  %v3215_v7 = vor.u32 %v1317_v3, %v1316_v18 }
  0xce   : > { %1375 = vrot.lane.b32.xlu0 %v3012_v58, %s2499_s16  ;;  %2230 = vmatprep.mubr.msk.bf16.mxu0 %vm876_vm15, %v838_v32  ;;  %v1188_v58 = vor.u32 %v2971_v1, %v1184_v44  ;;  %v1200_v1 = vrot.slane %v3100_v61, 1  ;;  %v1480_v44 = vsel %vm679_vm5, %v1477_v29, %v1479_v49  ;;  %v1482_v29 = vsel %vm679_vm5, %v1479_v49, %v1481_v35  ;;  %v2432_v32 = vld [vmem:[%s2577_s11 + $0x20] sm:$0xff]  }
  0xcf   : > { %v3149_v40 = vpop.permute.xlu1 %429  ;;  %v723_v33 = vsel %vm713_vm7, %v2432_v32, %v3131_v51  ;;  %v1319_v34 = vsel %vm495_vm2, %v1314_v31, %v3215_v7 }
  0xd0   : > { %v704_v41 = vpop.permute.xlu0 %703  ;;  %v1193_v19 = vsel %vm350_vm1, %v1188_v58, %v1192_v48  ;;  %v1201_v54 = vsel %vm350_vm1, %v1196_v62, %v1200_v1  ;;  %v725_v48 = vsel %vm713_vm7, %v2682_v8, %v3149_v40 }
  0xd1   : > { %v840_v22 = vsel %vm832_vm14, %v823_v37, %v704_v41  ;;  %1403 = vrot.lane.b32.xlu1 %v3144_v14, %s2500_s17  ;;  %v1321_v37 = vshrl.u32 %v3217_v0, 16  ;;  %v1324_v41 = vshll.u32 %v3217_v0, 16 }
  0xd2   : > { %1401 = vrot.lane.b32.xlu0 %v1362_v12, %s2500_s17  ;;  %2231 = vmatmul.mubr.msk.bf16.gmra.mxu0 %vm876_vm15, %v840_v22 }
  0xd3   : > { %v3165_v10 = vpop.permute.xlu1 %463  ;;  %v1436_v62 = vrot.slane %v1321_v37, 2  ;;  %v1437_v8 = vrot.slane %v1324_v41, 3 }
  0xd4   : > { %v462_v43 = vpop.permute.xlu0 %461 }
  0xd5   : > { %1464 = vrot.lane.b32.xlu1 %v1431_v45, %s2501_s18  ;;  %v740_v25 = vsel %vm730_vm8, %v723_v33, %v462_v43  ;;  %v1432_v43 = vrot.slane %v3192_v63, 2 }
  0xd6   : > { %1462 = vrot.lane.b32.xlu0 %v1427_v47, %s2501_s18  ;;  %v1366_v47 = vsel %vm557_vm3, %v1363_v13, %v1365_v39  ;;  %v742_v13 = vsel %vm730_vm8, %v725_v48, %v3165_v10  ;;  %v1323_v48 = vrot.slane %v1321_v37, 1 }
  0xd7   : > { %v490_v36 = vpop.permute.xlu1 %489 }
  0xd8   : > { %v488_v60 = vpop.permute.xlu0 %487  ;;  %v759_v40 = vsel %vm747_vm9, %v742_v13, %v490_v36 }
  0xd9   : > { %1226 = vrot.lane.b32.xlu1 %v1193_v19, %s2497_s14  ;;  %v757_v22 = vsel %vm747_vm9, %v740_v25, %v488_v60  ;;  %v1433_v19 = vrot.slane %v3189_v28, 3 }
  0xda   : > { %1495 = vrot.lane.b32.xlu0 %v1480_v44, %s2502_s19 }
  0xdb   : > { %v552_v4 = vpop.permute.xlu1 %551  ;;  %v1434_v59 = vor.u32 %v1433_v19, %v1432_v43 }
  0xdc   : > { %v550_v50 = vpop.permute.xlu0 %549 }
  0xdd   : > { %1228 = vrot.lane.b32.xlu1 %v1201_v54, %s2497_s14  ;;  %v774_v45 = vsel %vm764_vm10, %v757_v22, %v550_v50 }
  0xde   : > { %1497 = vrot.lane.b32.xlu0 %v1482_v29, %s2502_s19  ;;  %v776_v29 = vsel %vm764_vm10, %v759_v40, %v552_v4  ;;  %v3272_v4 = vor.u32 %v1437_v8, %v1436_v62  ;;  %v2114_v8 = vld [vmem:[%s2577_s11 + $0x120] sm:$0xf] }
  0xdf   : > { %v586_v12 = vpop.permute.xlu1 %585 }
  0xe0   : > { %v584_v20 = vpop.permute.xlu0 %583  ;;  %v793_v10 = vsel %vm781_vm11, %v776_v29, %v586_v12 }
  0xe1   : > { %1261 = vrot.lane.b32.xlu1 %v1246_v9, %s2496_s13  ;;  %v791_v49 = vsel %vm781_vm11, %v774_v45, %v584_v20 }
  0xe2   : > { %1259 = vrot.lane.b32.xlu0 %v3088_v57, %s2496_s13  ;;  %v1315_v57 = vsel %vm495_vm2, %v3090_v55, %v1314_v31  ;;  %v3239_v55 = vrot.slane %v3217_v0, 2  ;;  %v2113_v31 = vld [vmem:[%s2577_s11 + $0x11c] sm:$0xf] }
  0xe3   : > { %v612_v38 = vpop.permute.xlu1 %611 }
  0xe4   : > { %v610_v27 = vpop.permute.xlu0 %609  ;;  %v3268_v36 = vsel %vm557_vm3, %v1365_v39, %v3239_v55  ;;  %v810_v5 = vsel %vm798_vm12, %v793_v10, %v612_v38  ;;  %v1435_v38 = vsel %vm617_vm4, %v3146_v52, %v1434_v59  ;;  %v1485_v52 = vrot.slane %v3217_v0, 3  ;;  %v3323_v10 = vld [vmem:[%s2577_s11 + $0x124] ss:$0 sps:$4 sm:$0xff]  }
  0xe5   : > { %1287 = vrot.lane.b32.xlu1 %v3213_v42, %s2495_s12  ;;  %v808_v44 = vsel %vm798_vm12, %v791_v49, %v610_v27  ;;  %v1483_v27 = vrot.slane %v3177_v56, 3  ;;  %v1326_v49 = vrot.slane %v1324_v41, 2  ;;  %v3317_v41 = vcombine.low %v2113_v31, %v2114_v8 }
  0xe6   : > { %1285 = vrot.lane.b32.xlu0 %v1246_v9, %s2495_s12  ;;  %v2124_v9 = vcombine.low %v2111_v24, %v2111_v24  ;;  %v1439_v24 = vsel %vm617_vm4, %v1434_v59, %v3272_v4 }
  0xe7   : > { %v674_v51 = vpop.permute.xlu1 %673 }
  0xe8   : > { %v672_v58 = vpop.permute.xlu0 %671  ;;  %v827_v18 = vsel %vm815_vm13, %v810_v5, %v674_v51  ;;  %v1214_v39 = vshll.u32 %v2124_v9, 16  ;;  %v1249_v45 = vrot.slane %v2124_v9, 1 }
  0xe9   : > { %1348 = vrot.lane.b32.xlu1 %v1319_v34, %s2498_s15  ;;  %v825_v60 = vsel %vm815_vm13, %v808_v44, %v672_v58  ;;  %v1273_v44 = vrot.slane %v3217_v0, 1 }
  0xea   : > { %1346 = vrot.lane.b32.xlu0 %v1315_v57, %s2498_s15  ;;  %v2126_v57 = vcombine.low %v2113_v31, %v2113_v31  ;;  %v1216_v28 = vrot.slane %v1214_v39, 1  ;;  %v1250_v13 = vsel %vm435_vm0, %v3202_v15, %v1249_v45 }
  0xeb   : > { %v3258_v11 = vpop.permute.xlu1 %431 }
  0xec   : > { %v706_v54 = vpop.permute.xlu0 %705  ;;  %v1330_v22 = vshrl.u32 %v2126_v57, 16  ;;  %v1333_v51 = vshll.u32 %v2126_v57, 16  ;;  %v1275_v62 = vrot.slane %v2126_v57, 1  ;;  %v1369_v9 = vrot.slane %v2126_v57, 2 }
  0xed   : > { %v842_v50 = vsel %vm832_vm14, %v825_v60, %v706_v54  ;;  %1381 = vrot.lane.b32.xlu1 %v1366_v47, %s2499_s16  ;;  %v1327_v60 = vor.u32 %v1326_v49, %v1323_v48 }
  0xee   : > { %1379 = vrot.lane.b32.xlu0 %v3144_v14, %s2499_s16  ;;  %2234 = vmatprep.mubr.msk.bf16.mxu0 %vm876_vm15, %v842_v50  ;;  %v1204_v14 = vor.u32 %v3108_v2, %v1200_v1  ;;  %v1484_v2 = vsel %vm679_vm5, %v1481_v35, %v1483_v27  ;;  %v1212_v1 = vor.u32 %v3192_v63, %v1208_v26  ;;  %v1332_v43 = vrot.slane %v1330_v22, 1 }
  0xef   : > { %v434_v3 = vpop.permute.xlu1 %433  ;;  %v1486_v35 = vsel %vm679_vm5, %v1483_v27, %v1485_v52  ;;  %v1335_v19 = vrot.slane %v1333_v51, 2  ;;  %v1276_v29 = vsel %vm435_vm0, %v1273_v44, %v1275_v62  ;;  %v1274_v50 = vsel %vm435_vm0, %v3202_v15, %v1273_v44 }
  0xf0   : > { %v708_v12 = vpop.permute.xlu0 %707  ;;  %v1209_v61 = vsel %vm350_vm1, %v1204_v14, %v1208_v26  ;;  %v1217_v58 = vsel %vm350_vm1, %v1212_v1, %v1216_v28  ;;  %v729_v14 = vsel %vm713_vm7, %v2772_v53, %v434_v3  ;;  %v1441_v15 = vshrl.u32 %v3317_v41, 16 }
  0xf1   : > { %v844_v20 = vsel %vm832_vm14, %v827_v18, %v708_v12  ;;  %1407 = vrot.lane.b32.xlu1 %v3268_v36, %s2500_s17  ;;  %v1336_v54 = vor.u32 %v1335_v19, %v1332_v43  ;;  %v1328_v12 = vsel %vm495_vm2, %v3215_v7, %v1327_v60  ;;  %v1444_v26 = vshll.u32 %v3317_v41, 16 }
  0xf2   : > { %1405 = vrot.lane.b32.xlu0 %v1366_v47, %s2500_s17  ;;  %2235 = vmatmul.mubr.msk.bf16.gmra.mxu0 %vm876_vm15, %v844_v20  ;;  %v2433_v20 = vld [vmem:[%s2577_s11 + $0x30] sm:$0xff]   ;;  %v1450_v7 = vshrl.u32 %v3323_v10, 16  ;;  %v1370_v39 = vsel %vm557_vm3, %v3239_v55, %v1369_v9  ;;  %v1443_v28 = vrot.slane %v1441_v15, 2  ;;  %vm2504_vm0 = vmmov 0  }
  0xf3   : > { %v468_v32 = vpop.permute.xlu1 %467  ;;  %v1337_v18 = vsel %vm495_vm2, %v1327_v60, %v1336_v54  ;;  %v1489_v60 = vrot.slane %v3323_v10, 3 }
  0xf4   : > { %v466_v33 = vpop.permute.xlu0 %465  ;;  %v746_v31 = vsel %vm730_vm8, %v729_v14, %v468_v32  ;;  %v1393_v32 = vrot.slane %v3317_v41, 2  ;;  %v1452_v51 = vrot.slane %v1450_v7, 2 }
  0xf5   : > { %1468 = vrot.lane.b32.xlu1 %v1439_v24, %s2501_s18 }
  0xf6   : > { %1466 = vrot.lane.b32.xlu0 %v1435_v38, %s2501_s18  ;;  %v1453_v38 = vshll.u32 %v3323_v10, 16  ;;  %v1394_v19 = vsel %vm557_vm3, %v3239_v55, %v1393_v32 }
  0xf7   : > { %v494_v25 = vpop.permute.xlu1 %493 }
  0xf8   : > { %v492_v34 = vpop.permute.xlu0 %491 }
  0xf9   : > { %1230 = vrot.lane.b32.xlu1 %v1209_v61, %s2497_s14 }
  0xfa   : > { %1499 = vrot.lane.b32.xlu0 %v1484_v2, %s2502_s19 }
  0xfb   : > { %v556_v63 = vpop.permute.xlu1 %555 }
  0xfc   : > { %v554_v47 = vpop.permute.xlu0 %553 }
  0xfd   : > { %1232 = vrot.lane.b32.xlu1 %v1217_v58, %s2497_s14  ;;  %v1455_v58 = vrot.slane %v1453_v38, 3 }
  0xfe   : > { %1501 = vrot.lane.b32.xlu0 %v1486_v35, %s2502_s19 }
  0xff   : > { %v590_v40 = vpop.permute.xlu1 %589  ;;  %v1456_v44 = vor.u32 %v1455_v58, %v1452_v51 }
 0x100   : > { %v588_v37 = vpop.permute.xlu0 %587 }
 0x101   : > { %1265 = vrot.lane.b32.xlu1 %v1250_v13, %s2496_s13 }
 0x102   : > { %1263 = vrot.lane.b32.xlu0 %v3213_v42, %s2496_s13  ;;  %v727_v42 = vsel %vm713_vm7, %v2433_v20, %v3258_v11  ;;  %v763_v11 = vsel %vm747_vm9, %v746_v31, %v494_v25  ;;  %v1446_v25 = vrot.slane %v1444_v26, 3 }
 0x103   : > { %v616_v5 = vpop.permute.xlu1 %615  ;;  %v744_v24 = vsel %vm730_vm8, %v727_v42, %v466_v33  ;;  %v780_v57 = vsel %vm764_vm10, %v763_v11, %v556_v63  ;;  %v1395_v33 = vrot.slane %v3323_v10, 2 }
 0x104   : > { %v614_v59 = vpop.permute.xlu0 %613  ;;  %v761_v53 = vsel %vm747_vm9, %v744_v24, %v492_v34  ;;  %v797_v2 = vsel %vm781_vm11, %v780_v57, %v590_v40  ;;  %v1447_v13 = vor.u32 %v1446_v25, %v1443_v28 }
 0x105   : > { %1291 = vrot.lane.b32.xlu1 %v1276_v29, %s2495_s12  ;;  %v778_v61 = vsel %vm764_vm10, %v761_v53, %v554_v47  ;;  %v814_v34 = vsel %vm798_vm12, %v797_v2, %v616_v5  ;;  %v1396_v43 = vsel %vm557_vm3, %v1393_v32, %v1395_v33 }
 0x106   : > { %1289 = vrot.lane.b32.xlu0 %v1274_v50, %s2495_s12  ;;  %v795_v1 = vsel %vm781_vm11, %v778_v61, %v588_v37  ;;  %v1457_v40 = vsel %vm617_vm4, %v1447_v13, %v1456_v44  ;;  %v1487_v37 = vrot.slane %v3317_v41, 3 }
 0x107   : > { %v678_v3 = vpop.permute.xlu1 %677  ;;  %v812_v22 = vsel %vm798_vm12, %v795_v1, %v614_v59 }
 0x108   : > { %v676_v27 = vpop.permute.xlu0 %675  ;;  %v831_v35 = vsel %vm815_vm13, %v814_v34, %v678_v3  ;;  %v1490_v29 = vsel %vm679_vm5, %v1487_v37, %v1489_v60  ;;  %v1488_v50 = vsel %vm679_vm5, %v1485_v52, %v1487_v37 }
 0x109   : > { %1352 = vrot.lane.b32.xlu1 %v1337_v18, %s2498_s15  ;;  %v829_v45 = vsel %vm815_vm13, %v812_v22, %v676_v27 }
 0x10a   : > { %1350 = vrot.lane.b32.xlu0 %v1328_v12, %s2498_s15 }
 0x10b   : > { %v712_v63 = vpop.permute.xlu1 %711 }
 0x10c   : > { %v710_v47 = vpop.permute.xlu0 %709  ;;  %v848_v48 = vsel %vm832_vm14, %v831_v35, %v712_v63 }
 0x10d   : > { %v846_v49 = vsel %vm832_vm14, %v829_v45, %v710_v47  ;;  %1385 = vrot.lane.b32.xlu1 %v1370_v39, %s2499_s16 }
 0x10e   : > { %1383 = vrot.lane.b32.xlu0 %v3268_v36, %s2499_s16  ;;  %2238 = vmatprep.mubr.msk.bf16.mxu0 %vm876_vm15, %v846_v49  ;;  %v1448_v36 = vsel %vm617_vm4, %v3272_v4, %v1447_v13 }
 0x10f   : > { %2239 = vmatmul.mubr.msk.bf16.gmra.mxu0 %vm876_vm15, %v848_v48  ;;  %v1221_v62 = vpop.permute.xlu1 %1220 }
 0x110   : > { %v1219_v8 = vpop.permute.xlu0 %1218  ;;  %v1510_v26 = vsel %vm713_vm7, %v2870_v16, %v1221_v62 }
 0x111   : > { %1411 = vrot.lane.b32.xlu1 %v1396_v43, %s2500_s17  ;;  %v1508_v20 = vsel %vm713_vm7, %v2873_v17, %v1219_v8 }
 0x112   : > { %1409 = vrot.lane.b32.xlu0 %v1394_v19, %s2500_s17 }
 0x113   : > { %v1254_v55 = vpop.permute.xlu1 %1253 }
 0x114   : > { %v1252_v54 = vpop.permute.xlu0 %1251  ;;  %v1526_v24 = vsel %vm730_vm8, %v1510_v26, %v1254_v55 }
 0x115   : > { %1472 = vrot.lane.b32.xlu1 %v1457_v40, %s2501_s18  ;;  %v1524_v42 = vsel %vm730_vm8, %v1508_v20, %v1252_v54 }
 0x116   : > { %1470 = vrot.lane.b32.xlu0 %v1448_v36, %s2501_s18 }
 0x117   : > { %v1280_v5 = vpop.permute.xlu1 %1279 }
 0x118   : > { %v1278_v59 = vpop.permute.xlu0 %1277  ;;  %v1542_v38 = vsel %vm747_vm9, %v1526_v24, %v1280_v5 }
 0x119   : > { %1505 = vrot.lane.b32.xlu1 %v1490_v29, %s2502_s19  ;;  %v1540_v0 = vsel %vm747_vm9, %v1524_v42, %v1278_v59 }
 0x11a   : > { %1503 = vrot.lane.b32.xlu0 %v1488_v50, %s2502_s19 }
 0x11b   : > { %v1341_v4 = vpop.permute.xlu1 %1340 }
 0x11c   : > { %v1339_v41 = vpop.permute.xlu0 %1338  ;;  %v1558_v3 = vsel %vm764_vm10, %v1542_v38, %v1341_v4 }
 0x11d   : > { %v1556_v15 = vsel %vm764_vm10, %v1540_v0, %v1339_v41 }
 0x11f   : > { %v1374_v10 = vpop.permute.xlu1 %1373 }
 0x120   : > { %v1372_v9 = vpop.permute.xlu0 %1371  ;;  %v1574_v39 = vsel %vm781_vm11, %v1558_v3, %v1374_v10 }
 0x121   : > { %v1572_v31 = vsel %vm781_vm11, %v1556_v15, %v1372_v9 }
 0x123   : > { %v1400_v18 = vpop.permute.xlu1 %1399 }
 0x124   : > { %v1398_v12 = vpop.permute.xlu0 %1397  ;;  %v1590_v16 = vsel %vm798_vm12, %v1574_v39, %v1400_v18  ;;  %v2503_v18 = vmov 0.0  }
 0x125   : > { %v1588_v7 = vsel %vm798_vm12, %v1572_v31, %v1398_v12  ;;  %2242 = vmatprep.subr.mxu1 %v2503_v18  ;;  %2274 = vmatprep.mubr.msk.f32.mxu1 %vm2504_vm0, %v2503_v18 }
 0x127   : > { %v1461_v52 = vpop.permute.xlu1 %1460 }
 0x128   : > { %v1459_v14 = vpop.permute.xlu0 %1458  ;;  %v1606_v57 = vsel %vm815_vm13, %v1590_v16, %v1461_v52 }
 0x129   : > { %v1604_v17 = vsel %vm815_vm13, %v1588_v7, %v1459_v14 }
 0x12b   : > { %v1223_v11 = vpop.permute.xlu1 %1222 }
 0x12c   : > { %v1492_v53 = vpop.permute.xlu0 %1491  ;;  %v1512_v63 = vsel %vm713_vm7, %v2882_v21, %v1223_v11 }
 0x12d   : > { %v1620_v27 = vsel %vm832_vm14, %v1604_v17, %v1492_v53 }
 0x12e   : > { %2283 = vmatprep.mubr.msk.bf16.mxu0 %vm876_vm15, %v1620_v27 }
 0x12f   : > { %v1225_v61 = vpop.permute.xlu1 %1224 }
 0x130   : > { %v1494_v32 = vpop.permute.xlu0 %1493  ;;  %v1514_v13 = vsel %vm713_vm7, %v2910_v23, %v1225_v61 }
 0x131   : > { %v1622_v33 = vsel %vm832_vm14, %v1606_v57, %v1494_v32 }
 0x132   : > { %2284 = vmatmul.mubr.msk.bf16.vlgmr.msra.gmra.mxu0 %vm876_vm15, %v1622_v33 }
 0x133   : > { %v1258_v2 = vpop.permute.xlu1 %1257 }
 0x134   : > { %v1256_v1 = vpop.permute.xlu0 %1255  ;;  %v1530_v62 = vsel %vm730_vm8, %v1514_v13, %v1258_v2 }
 0x135   : > { %v1528_v47 = vsel %vm730_vm8, %v1512_v63, %v1256_v1 }
 0x137   : > { %v1284_v28 = vpop.permute.xlu1 %1283 }
 0x138   : > { %v1282_v25 = vpop.permute.xlu0 %1281  ;;  %v1546_v40 = vsel %vm747_vm9, %v1530_v62, %v1284_v28 }
 0x139   : > { %v1544_v48 = vsel %vm747_vm9, %v1528_v47, %v1282_v25 }
 0x13b   : > { %v1345_v34 = vpop.permute.xlu1 %1344 }
 0x13c   : > { %v1343_v22 = vpop.permute.xlu0 %1342  ;;  %v1562_v60 = vsel %vm764_vm10, %v1546_v40, %v1345_v34 }
 0x13d   : > { %v1560_v19 = vsel %vm764_vm10, %v1544_v48, %v1343_v22 }
 0x13f   : > { %v1378_v51 = vpop.permute.xlu1 %1377 }
 0x140   : > { %v1376_v58 = vpop.permute.xlu0 %1375  ;;  %v1578_v54 = vsel %vm781_vm11, %v1562_v60, %v1378_v51 }
 0x141   : > { %v1576_v44 = vsel %vm781_vm11, %v1560_v19, %v1376_v58 }
 0x143   : > { %v1404_v35 = vpop.permute.xlu1 %1403 }
 0x144   : > { %v1402_v45 = vpop.permute.xlu0 %1401  ;;  %v1594_v23 = vsel %vm798_vm12, %v1578_v54, %v1404_v35 }
 0x145   : > { %v1592_v8 = vsel %vm798_vm12, %v1576_v44, %v1402_v45 }
 0x147   : > { %v1465_v49 = vpop.permute.xlu1 %1464 }
 0x148   : > { %v1463_v43 = vpop.permute.xlu0 %1462  ;;  %v1610_v29 = vsel %vm815_vm13, %v1594_v23, %v1465_v49 }
 0x149   : > { %v1608_v21 = vsel %vm815_vm13, %v1592_v8, %v1463_v43 }
 0x14b   : > { %v1227_v36 = vpop.permute.xlu1 %1226 }
 0x14c   : > { %v1496_v37 = vpop.permute.xlu0 %1495  ;;  %v1516_v15 = vsel %vm713_vm7, %v2948_v6, %v1227_v36 }
 0x14d   : > { %v1624_v55 = vsel %vm832_vm14, %v1608_v21, %v1496_v37 }
 0x14e   : > { %2287 = vmatprep.mubr.msk.bf16.mxu0 %vm876_vm15, %v1624_v55 }
 0x14f   : > { %v1229_v50 = vpop.permute.xlu1 %1228 }
 0x150   : > { %v1498_v5 = vpop.permute.xlu0 %1497  ;;  %v1518_v17 = vsel %vm713_vm7, %v3052_v30, %v1229_v50 }
 0x151   : > { %v1626_v59 = vsel %vm832_vm14, %v1610_v29, %v1498_v5 }
 0x152   : > { %2288 = vmatmul.mubr.msk.bf16.gmra.mxu0 %vm876_vm15, %v1626_v59 }
 0x153   : > { %v1262_v4 = vpop.permute.xlu1 %1261 }
 0x154   : > { %v1260_v41 = vpop.permute.xlu0 %1259  ;;  %v1534_v53 = vsel %vm730_vm8, %v1518_v17, %v1262_v4 }
 0x155   : > { %v1532_v26 = vsel %vm730_vm8, %v1516_v15, %v1260_v41 }
 0x157   : > { %v1288_v10 = vpop.permute.xlu1 %1287 }
 0x158   : > { %v1286_v9 = vpop.permute.xlu0 %1285  ;;  %v1550_v27 = vsel %vm747_vm9, %v1534_v53, %v1288_v10 }
 0x159   : > { %v1548_v31 = vsel %vm747_vm9, %v1532_v26, %v1286_v9 }
 0x15b   : > { %v1349_v12 = vpop.permute.xlu1 %1348 }
 0x15c   : > { %v1347_v20 = vpop.permute.xlu0 %1346  ;;  %v1566_v57 = vsel %vm764_vm10, %v1550_v27, %v1349_v12 }
 0x15d   : > { %v1564_v38 = vsel %vm764_vm10, %v1548_v31, %v1347_v20 }
 0x15f   : > { %v1382_v42 = vpop.permute.xlu1 %1381 }
 0x160   : > { %v1380_v0 = vpop.permute.xlu0 %1379  ;;  %v1582_v32 = vsel %vm781_vm11, %v1566_v57, %v1382_v42 }
 0x161   : > { %v1580_v11 = vsel %vm781_vm11, %v1564_v38, %v1380_v0 }
 0x163   : > { %v1408_v52 = vpop.permute.xlu1 %1407 }
 0x164   : > { %v1406_v14 = vpop.permute.xlu0 %1405  ;;  %v1598_v30 = vsel %vm798_vm12, %v1582_v32, %v1408_v52 }
 0x165   : > { %v1596_v3 = vsel %vm798_vm12, %v1580_v11, %v1406_v14 }
 0x167   : > { %v1469_v24 = vpop.permute.xlu1 %1468 }
 0x168   : > { %v1467_v7 = vpop.permute.xlu0 %1466  ;;  %v1614_v33 = vsel %vm815_vm13, %v1598_v30, %v1469_v24  ;;  %v3472_v24 = vld [vmem:[%s3613_s3] ss:$0 sm:$0xff] }
 0x169   : > { %v1612_v6 = vsel %vm815_vm13, %v1596_v3, %v1467_v7 }
 0x16b   : > { %v1231_v39 = vpop.permute.xlu1 %1230 }
 0x16c   : > { %v1500_v16 = vpop.permute.xlu0 %1499  ;;  %v1520_v49 = vsel %vm713_vm7, %v3083_v46, %v1231_v39 }
 0x16d   : > { %v1628_v61 = vsel %vm832_vm14, %v1612_v6, %v1500_v16 }
 0x16e   : > { %2291 = vmatprep.mubr.msk.bf16.mxu0 %vm876_vm15, %v1628_v61 }
 0x16f   : > { %v1233_v2 = vpop.permute.xlu1 %1232 }
 0x170   : > { %v1502_v1 = vpop.permute.xlu0 %1501  ;;  %v1522_v43 = vsel %vm713_vm7, %v3177_v56, %v1233_v2 }
 0x171   : > { %v1630_v28 = vsel %vm832_vm14, %v1614_v33, %v1502_v1 }
 0x172   : > { %2292 = vmatmul.mubr.msk.bf16.gmra.mxu0 %vm876_vm15, %v1630_v28  ;;  %v3463_v59 = vpop.f32.mrf.mxu0 }
 0x173   : > { %v1266_v25 = vpop.permute.xlu1 %1265 }
 0x174   : > { %v1264_v34 = vpop.permute.xlu0 %1263  ;;  %v1538_v19 = vsel %vm730_vm8, %v1522_v43, %v1266_v25  ;;  %v3465_v4 = vpop.f32.mrf.mxu0 }
 0x175   : > { %v1536_v13 = vsel %vm730_vm8, %v1520_v49, %v1264_v34 }
 0x176   : > { %v2229_v41 = vpop.f32.mrf.mxu0 }
 0x177   : > { %v1292_v22 = vpop.permute.xlu1 %1291 }
 0x178   : > { %v1290_v51 = vpop.permute.xlu0 %1289  ;;  %v1554_v44 = vsel %vm747_vm9, %v1538_v19, %v1292_v22  ;;  %v3467_v10 = vpop.f32.mrf.mxu0 }
 0x179   : > { %v1552_v62 = vsel %vm747_vm9, %v1536_v13, %v1290_v51  ;;  %v935_v43 = vadd.f32 %v3472_v24, %v3467_v10  ;;  %v932_v13 = vadd.f32 %v3472_v24, %v3465_v4 }
 0x17b   : > { %v1353_v58 = vpop.permute.xlu1 %1352 }
 0x17c   : > { %v1351_v35 = vpop.permute.xlu0 %1350  ;;  %v1570_v21 = vsel %vm764_vm10, %v1554_v44, %v1353_v58  ;;  %v995_v44 = vmax.f32 %v935_v43, 0.0 }
 0x17d   : > { %v1568_v36 = vsel %vm764_vm10, %v1552_v62, %v1351_v35  ;;  %v994_v62 = vmax.f32 %v932_v13, 0.0 }
 0x17f   : > { %v1386_v45 = vpop.permute.xlu1 %1385 }
 0x180   : > { %v1384_v63 = vpop.permute.xlu0 %1383  ;;  %v1586_v37 = vsel %vm781_vm11, %v1570_v21, %v1386_v45  ;;  %v943_v45 = vadd.f32 %v2229_v41, %v3472_v24 }
 0x181   : > { %v1584_v46 = vsel %vm781_vm11, %v1568_v36, %v1384_v63 }
 0x182   : > { %v997_v49 = vmax.f32 %v943_v45, 0.0 }
 0x183   : > { %v1412_v47 = vpop.permute.xlu1 %1411 }
 0x184   : > { %v1410_v48 = vpop.permute.xlu0 %1409  ;;  %v1602_v56 = vsel %vm798_vm12, %v1586_v37, %v1412_v47  ;;  %v940_v47 = vadd.f32 %v3463_v59, %v3472_v24 }
 0x185   : > { %v1600_v60 = vsel %vm798_vm12, %v1584_v46, %v1410_v48 }
 0x186   : > { %v996_v19 = vmax.f32 %v940_v47, 0.0 }
 0x187   : > { %v1473_v8 = vpop.permute.xlu1 %1472 }
 0x188   : > { %v1471_v40 = vpop.permute.xlu0 %1470  ;;  %v1618_v55 = vsel %vm815_vm13, %v1602_v56, %v1473_v8  ;;  %v3514_v8 = vld [vmem:[%s273_s29] sm:$0x1] }
 0x189   : > { %v1616_v54 = vsel %vm815_vm13, %v1600_v60, %v1471_v40 }
 0x18b   : > { %v1506_v23 = vpop.permute.xlu1 %1505 }
 0x18c   : > { %v1504_v29 = vpop.permute.xlu0 %1503  ;;  %v1634_v50 = vsel %vm832_vm14, %v1618_v55, %v1506_v23 }
 0x18d   : > { %v1632_v5 = vsel %vm832_vm14, %v1616_v54, %v1504_v29 }
 0x18e   : > { %2295 = vmatprep.mubr.msk.bf16.mxu0 %vm876_vm15, %v1632_v5 }
 0x18f   : > { %2296 = vmatmul.mubr.msk.bf16.gmra.mxu0 %vm876_vm15, %v1634_v50 }
 0x192   : > { %v2232_v9 = vpop.f32.mrf.mxu0 }
 0x193   : > { %v956_v25 = vadd.f32 %v2232_v9, %v3472_v24 }
 0x194   : > { %v947_v12 = vpop.f32.mrf.mxu0 }
 0x195   : > { %v1000_v58 = vmax.f32 %v956_v25, 0.0  ;;  %v948_v35 = vadd.f32 %v3472_v24, %v947_v12 }
 0x196   : > { %v2233_v20 = vpop.f32.mrf.mxu0 }
 0x197   : > { %v959_v1 = vadd.f32 %v2233_v20, %v3472_v24  ;;  %v998_v48 = vmax.f32 %v948_v35, 0.0 }
 0x198   : > { %v950_v42 = vpop.f32.mrf.mxu0 }
 0x199   : > { %v1001_v22 = vmax.f32 %v959_v1, 0.0  ;;  %v951_v51 = vadd.f32 %v3472_v24, %v950_v42 }
 0x19b   : > { %v999_v63 = vmax.f32 %v951_v51, 0.0  ;;  %v1080_v51 = vld [vmem:[#allocation2] sm:$0x1] }
 0x1b2   : > { %v2236_v0 = vpop.f32.mrf.mxu0 }
 0x1b3   : > { %v972_v57 = vadd.f32 %v2236_v0, %v3472_v24 }
 0x1b4   : > { %v963_v52 = vpop.f32.mrf.mxu0 }
 0x1b5   : > { %v1004_v33 = vmax.f32 %v972_v57, 0.0  ;;  %v964_v2 = vadd.f32 %v3472_v24, %v963_v52 }
 0x1b6   : > { %v2237_v14 = vpop.f32.mrf.mxu0 }
 0x1b7   : > { %v975_v39 = vadd.f32 %v2237_v14, %v3472_v24  ;;  %v1002_v34 = vmax.f32 %v964_v2, 0.0 }
 0x1b8   : > { %v966_v15 = vpop.f32.mrf.mxu0 }
 0x1b9   : > { %v1005_v32 = vmax.f32 %v975_v39, 0.0  ;;  %v967_v30 = vadd.f32 %v3472_v24, %v966_v15 }
 0x1bb   : > { %v1003_v28 = vmax.f32 %v967_v30, 0.0 }
 0x1cf   : > { %v2240_v26 = vpop.f32.mrf.mxu0 }
 0x1d0   : > { %v988_v38 = vadd.f32 %v2240_v26, %v3472_v24 }
 0x1d1   : > { %v979_v31 = vpop.f32.mrf.mxu0 }
 0x1d2   : > { %v1008_v27 = vmax.f32 %v988_v38, 0.0  ;;  %v980_v6 = vadd.f32 %v3472_v24, %v979_v31 }
 0x1d3   : > { %v2241_v7 = vpop.f32.mrf.mxu0 }
 0x1d4   : > { %v991_v17 = vadd.f32 %v2241_v7, %v3472_v24  ;;  %v1006_v61 = vmax.f32 %v980_v6, 0.0 }
 0x1d5   : > { %v982_v11 = vpop.f32.mrf.mxu0 }
 0x1d6   : > { %v1009_v53 = vmax.f32 %v991_v17, 0.0  ;;  %v983_v3 = vadd.f32 %v3472_v24, %v982_v11 }
 0x1d8   : > { %2243 = vmatpush3.msra.mxu1 %v1009_v53  ;;  %v1007_v16 = vmax.f32 %v983_v3, 0.0 }
 0x1d9   : > { %2244 = vmatprep.subr.mxu1 %v2503_v18 }
 0x1da   : > { %2245 = vmatpush3.msra.mxu1 %v1008_v27 }
 0x1db   : > { %2246 = vmatprep.subr.mxu1 %v2503_v18 }
 0x1dc   : > { %2247 = vmatpush3.msra.mxu1 %v1007_v16 }
 0x1dd   : > { %2248 = vmatprep.subr.mxu1 %v2503_v18 }
 0x1de   : > { %2249 = vmatpush3.msra.mxu1 %v1006_v61 }
 0x1df   : > { %2250 = vmatprep.subr.mxu1 %v2503_v18 }
 0x1e0   : > { %2251 = vmatpush3.msra.mxu1 %v1005_v32 }
 0x1e1   : > { %2252 = vmatprep.subr.mxu1 %v2503_v18 }
 0x1e2   : > { %2253 = vmatpush3.msra.mxu1 %v1004_v33 }
 0x1e3   : > { %2254 = vmatprep.subr.mxu1 %v2503_v18 }
 0x1e4   : > { %2255 = vmatpush3.msra.mxu1 %v1003_v28 }
 0x1e5   : > { %2256 = vmatprep.subr.mxu1 %v2503_v18 }
 0x1e6   : > { %2257 = vmatpush3.msra.mxu1 %v1002_v34 }
 0x1e7   : > { %2258 = vmatprep.subr.mxu1 %v2503_v18 }
 0x1e8   : > { %2259 = vmatpush3.msra.mxu1 %v1001_v22 }
 0x1e9   : > { %2260 = vmatprep.subr.mxu1 %v2503_v18 }
 0x1ea   : > { %2261 = vmatpush3.msra.mxu1 %v1000_v58 }
 0x1eb   : > { %2262 = vmatprep.subr.mxu1 %v2503_v18 }
 0x1ec   : > { %2263 = vmatpush3.msra.mxu1 %v999_v63 }
 0x1ed   : > { %2264 = vmatprep.subr.mxu1 %v2503_v18 }
 0x1ee   : > { %2265 = vmatpush3.msra.mxu1 %v998_v48 }
 0x1ef   : > { %2266 = vmatprep.subr.mxu1 %v2503_v18 }
 0x1f0   : > { %2267 = vmatpush3.msra.mxu1 %v997_v49 }
 0x1f1   : > { %2268 = vmatprep.subr.mxu1 %v2503_v18 }
 0x1f2   : > { %2269 = vmatpush3.msra.mxu1 %v996_v19  ;;  %v2285_v40 = vpop.f32.mrf.mxu0 }
 0x1f3   : > { %2270 = vmatprep.subr.mxu1 %v2503_v18  ;;  %v1724_v30 = vadd.f32 %v2285_v40, %v3472_v24 }
 0x1f4   : > { %2271 = vmatpush3.msra.mxu1 %v995_v44  ;;  %v3521_v21 = vpop.f32.mrf.mxu0 }
 0x1f5   : > { %2272 = vmatprep.subr.mxu1 %v2503_v18  ;;  %v1780_v28 = vmax.f32 %v1724_v30, 0.0  ;;  %v1716_v25 = vadd.f32 %v3472_v24, %v3521_v21 }
 0x1f6   : > { %2273 = vmatpush3.msra.mxu1 %v994_v62  ;;  %v2286_v36 = vpop.f32.mrf.mxu0 }
 0x1f7   : > { %2275 = vmatmul.mubr.f32.vlgmr.msra.gmra.mxu1 %v3514_v8  ;;  %2299 = vmatprep.subr.mxu1 %v2503_v18  ;;  %v1727_v61 = vadd.f32 %v2286_v36, %v3472_v24  ;;  %v1778_v22 = vmax.f32 %v1716_v25, 0.0 }
 0x1f8   : > { %2331 = vmatprep.mubr.msk.f32.mxu1 %vm2504_vm0, %v2503_v18  ;;  %v1718_v37 = vpop.f32.mrf.mxu0 }
 0x1f9   : > { %v1781_v2 = vmax.f32 %v1727_v61, 0.0  ;;  %v1719_v1 = vadd.f32 %v3472_v24, %v1718_v37 }
 0x1fb   : > { %v1779_v34 = vmax.f32 %v1719_v1, 0.0 }
 0x212   : > { %v2289_v46 = vpop.f32.mrf.mxu0 }
 0x213   : > { %v1740_v3 = vadd.f32 %v2289_v46, %v3472_v24 }
 0x214   : > { %v1731_v56 = vpop.f32.mrf.mxu0 }
 0x215   : > { %v1784_v16 = vmax.f32 %v1740_v3, 0.0  ;;  %v1732_v57 = vadd.f32 %v3472_v24, %v1731_v56 }
 0x216   : > { %v2290_v60 = vpop.f32.mrf.mxu0 }
 0x217   : > { %v1743_v11 = vadd.f32 %v2290_v60, %v3472_v24  ;;  %v1782_v33 = vmax.f32 %v1732_v57, 0.0 }
 0x218   : > { %v1734_v55 = vpop.f32.mrf.mxu0 }
 0x219   : > { %v1785_v6 = vmax.f32 %v1743_v11, 0.0  ;;  %v1735_v39 = vadd.f32 %v3472_v24, %v1734_v55 }
 0x21b   : > { %v1783_v32 = vmax.f32 %v1735_v39, 0.0 }
 0x232   : > { %v2293_v54 = vpop.f32.mrf.mxu0 }
 0x233   : > { %v1756_v15 = vadd.f32 %v2293_v54, %v3472_v24 }
 0x234   : > { %v1747_v23 = vpop.f32.mrf.mxu0 }
 0x235   : > { %v1788_v38 = vmax.f32 %v1756_v15, 0.0  ;;  %v1748_v17 = vadd.f32 %v3472_v24, %v1747_v23 }
 0x236   : > { %v2294_v29 = vpop.f32.mrf.mxu0 }
 0x237   : > { %v1759_v52 = vadd.f32 %v2294_v29, %v3472_v24  ;;  %v1786_v27 = vmax.f32 %v1748_v17, 0.0 }
 0x238   : > { %v1750_v50 = vpop.f32.mrf.mxu0 }
 0x239   : > { %v1789_v31 = vmax.f32 %v1759_v52, 0.0  ;;  %v1751_v7 = vadd.f32 %v3472_v24, %v1750_v50 }
 0x23b   : > { %v1787_v53 = vmax.f32 %v1751_v7, 0.0 }
 0x24f   : > { %v2297_v5 = vpop.f32.mrf.mxu0 }
 0x250   : > { %v1772_v41 = vadd.f32 %v2297_v5, %v3472_v24 }
 0x251   : > { %v1763_v59 = vpop.f32.mrf.mxu0 }
 0x252   : > { %v1792_v42 = vmax.f32 %v1772_v41, 0.0  ;;  %v1764_v0 = vadd.f32 %v3472_v24, %v1763_v59 }
 0x253   : > { %v2298_v4 = vpop.f32.mrf.mxu0 }
 0x254   : > { %v1775_v10 = vadd.f32 %v2298_v4, %v3472_v24  ;;  %v1790_v26 = vmax.f32 %v1764_v0, 0.0 }
 0x255   : > { %v1766_v9 = vpop.f32.mrf.mxu0 }
 0x256   : > { %v1793_v12 = vmax.f32 %v1775_v10, 0.0  ;;  %v1767_v20 = vadd.f32 %v3472_v24, %v1766_v9  ;;  %v1864_v24 = vld [vmem:[#allocation2 + $0x1] sm:$0x1] }
 0x258   : > { %2300 = vmatpush3.msra.mxu1 %v1793_v12  ;;  %v1791_v14 = vmax.f32 %v1767_v20, 0.0 }
 0x259   : > { %2301 = vmatprep.subr.mxu1 %v2503_v18 }
 0x25a   : > { %2302 = vmatpush3.msra.mxu1 %v1792_v42 }
 0x25b   : > { %2303 = vmatprep.subr.mxu1 %v2503_v18 }
 0x25c   : > { %2304 = vmatpush3.msra.mxu1 %v1791_v14 }
 0x25d   : > { %2305 = vmatprep.subr.mxu1 %v2503_v18 }
 0x25e   : > { %2306 = vmatpush3.msra.mxu1 %v1790_v26 }
 0x25f   : > { %2307 = vmatprep.subr.mxu1 %v2503_v18 }
 0x260   : > { %2308 = vmatpush3.msra.mxu1 %v1789_v31 }
 0x261   : > { %2309 = vmatprep.subr.mxu1 %v2503_v18 }
 0x262   : > { %2310 = vmatpush3.msra.mxu1 %v1788_v38 }
 0x263   : > { %2311 = vmatprep.subr.mxu1 %v2503_v18 }
 0x264   : > { %2312 = vmatpush3.msra.mxu1 %v1787_v53 }
 0x265   : > { %2313 = vmatprep.subr.mxu1 %v2503_v18 }
 0x266   : > { %2314 = vmatpush3.msra.mxu1 %v1786_v27 }
 0x267   : > { %2315 = vmatprep.subr.mxu1 %v2503_v18 }
 0x268   : > { %2316 = vmatpush3.msra.mxu1 %v1785_v6 }
 0x269   : > { %2317 = vmatprep.subr.mxu1 %v2503_v18 }
 0x26a   : > { %2318 = vmatpush3.msra.mxu1 %v1784_v16 }
 0x26b   : > { %2319 = vmatprep.subr.mxu1 %v2503_v18 }
 0x26c   : > { %2320 = vmatpush3.msra.mxu1 %v1783_v32 }
 0x26d   : > { %2321 = vmatprep.subr.mxu1 %v2503_v18 }
 0x26e   : > { %2322 = vmatpush3.msra.mxu1 %v1782_v33 }
 0x26f   : > { %2323 = vmatprep.subr.mxu1 %v2503_v18 }
 0x270   : > { %2324 = vmatpush3.msra.mxu1 %v1781_v2 }
 0x271   : > { %2325 = vmatprep.subr.mxu1 %v2503_v18 }
 0x272   : > { %2326 = vmatpush3.msra.mxu1 %v1780_v28 }
 0x273   : > { %2327 = vmatprep.subr.mxu1 %v2503_v18 }
 0x274   : > { %2328 = vmatpush3.msra.mxu1 %v1779_v34 }
 0x275   : > { %2329 = vmatprep.subr.mxu1 %v2503_v18 }
 0x276   : > { %2330 = vmatpush3.msra.mxu1 %v1778_v22 }
 0x277   : > { %2332 = vmatmul.mubr.f32.vlgmr.msra.gmra.mxu1 %v3514_v8 }
 0x2b7   : > { %v1076_v58 = vpop.f32.mrf.mxu1 }
 0x2b8   : > { %v1081_v35 = vadd.f32 %v1080_v51, %v1076_v58 }
 0x2b9   : > { %v2276_v45 = vpop.f32.mrf.mxu1 }
 0x2ba   : > { %1082 = vst [vmem:[#allocation2] sm:$0x1] %v1081_v35 }
 0x336   : > { %1870 = sbr.rel (%p2141_p6) target bundleno = 1059 (0x423), region = 52 }
 0x337   : > { %v1860_v63 = vpop.f32.mrf.mxu1 }
 0x338   : > { %v1865_v47 = vadd.f32 %v1864_v24, %v1860_v63 }
 0x339   : > { %v2333_v48 = vpop.f32.mrf.mxu1 }
 0x33a   : > { %1866 = vst [vmem:[#allocation2 + $0x1] sm:$0x1] %v1865_v47 }
 0x33b   : > { %v2434_v18 = vld [vmem:[%s3614_s4 + $0x38] sm:$0xff]   ;;  %v2505_v49 = vmov 0.0   ;;  %v2435_v43 = vld [vmem:[%s3614_s4 + $0x30] sm:$0xff]   ;;  %vm2506_vm1 = vmmov 0   ;;  %v2436_v19 = vld [vmem:[%s3614_s4 + $0x28] sm:$0xff]  }
 0x33c   : > { %2334 = vmatprep.subr.bf16.mxu0 %v2505_v49  ;;  %2350 = vmatprep.mubr.msk.bf16.mxu0 %vm2506_vm1, %v2505_v49  ;;  %v2437_v13 = vld [vmem:[%s3614_s4 + $0x20] sm:$0xff]   ;;  %v2438_v44 = vld [vmem:[%s3614_s4 + $0x18] sm:$0xff]   ;;  %v2439_v62 = vld [vmem:[%s3614_s4 + $0x10] sm:$0xff]  }
 0x33d   : > { %2335 = vmatpush3.bf16.msra.mxu0 %v2434_v18  ;;  %v2440_v8 = vld [vmem:[%s3614_s4 + $0x8] sm:$0xff]   ;;  %v2441_v40 = vld [vmem:[%s3614_s4] sm:$0xff]  }
 0x33e   : > { %2336 = vmatprep.subr.bf16.mxu0 %v2505_v49  ;;  %v2142_v37 = vld [vmem:[%s3615_s5] ss:$0 sm:$0xff] }
 0x341   : > { %2337 = vmatpush3.bf16.msra.mxu0 %v2435_v43  ;;  %v1871_v21 = vld [vmem:[#allocation2] sm:$0x3] }
 0x342   : > { %2338 = vmatprep.subr.bf16.mxu0 %v2505_v49  ;;  %v1872_v36 = vpack.c.bf16 %v1871_v21, %v1871_v21 }
 0x345   : > { %2339 = vmatpush3.bf16.msra.mxu0 %v2436_v19 }
 0x346   : > { %2340 = vmatprep.subr.bf16.mxu0 %v2505_v49 }
 0x349   : > { %2341 = vmatpush3.bf16.msra.mxu0 %v2437_v13 }
 0x34a   : > { %2342 = vmatprep.subr.bf16.mxu0 %v2505_v49 }
 0x34d   : > { %2343 = vmatpush3.bf16.msra.mxu0 %v2438_v44 }
 0x34e   : > { %2344 = vmatprep.subr.bf16.mxu0 %v2505_v49 }
 0x351   : > { %2345 = vmatpush3.bf16.msra.mxu0 %v2439_v62 }
 0x352   : > { %2346 = vmatprep.subr.bf16.mxu0 %v2505_v49 }
 0x355   : > { %2347 = vmatpush3.bf16.msra.mxu0 %v2440_v8 }
 0x356   : > { %2348 = vmatprep.subr.bf16.mxu0 %v2505_v49 }
 0x359   : > { %2349 = vmatpush3.bf16.msra.mxu0 %v2441_v40 }
 0x35c   : > { %2351 = vmatmul.mubr.bf16.vlgmr.msra.gmra.mxu0 %v1872_v36 }
 0x41c   : > { %v1978_v46 = vpop.f32.mrf.mxu0 }
 0x41d   : > { %v1979_v56 = vadd.f32 %v2142_v37, %v1978_v46 }
 0x41e   : > { %v2352_v60 = vpop.f32.mrf.mxu0 }
 0x41f   : > { %1984 = vst [vmem:[#allocation3] sm:$0x3] %v1979_v56 }
 0x420   : > { %v1981_v55 = vpop.f32.mrf.mxu0 }
 0x422   : > { %v2353_v54 = vpop.f32.mrf.mxu0 }
 0x423 PF: > { %p3586_p7 = scmp.eq.s32.totalorder %s2061_s24, 2  ;;  %s2507_s14 = smov [#allocation3]  }
 0x424   : > { %s1994_s26 = sshll.u32 %s2507_s14, 4  ;;  %s1995_s26 = int_to_ptr.vmem [resolvable:$true] %s1994_s26 }
 0x425   : > { %s2442_s29 = scalar_lea.vmem %s1995_s26, 32  ;;  %p2449_p11 = scmp.lt.s32.totalorder %s1995_s26, %s1995_s26 }
 0x426   : > { %p2443_p8 = scmp.ne.s32.totalorder %s1995_s26, %s2442_s29  ;;  %p2450_p12 = scmp.lt.s32.totalorder %s2442_s29, %s2442_s29 }
 0x428   : > { %p2444_p9 = pnand %p2443_p8, %p3586_p7  ;;  %p2451_p13 = por %p2450_p12, %p2449_p11 }
 0x42a   : > { %p2445_p10 = pneg %p2444_p9 }
 0x42c   : > { %p2452_p0 = pnand %p2451_p13, %p2445_p10 }
 0x42e   : > { %2455 = shalt.err (!%p2452_p0)
}
 0x42f   : > { %2357 = dma.vmem_to_hbm [thread:$0]  (%p3586_p7), %s1995_s26, 32, %s3616_s6, [#allocation4]  }
 0x430   : > { %2479 = dma.done.wait (%p3586_p7), [#allocation4], 32  }
 0x431   : > { %2481 = vsyncadd (%p3586_p7), [#allocation4], 4294967264 }
 0x432 PF: > { %s17_s23 = sadd.s32 1, %s2492_s23   ;;  %s3618_s21 = smov %s2488_s22 }
 0x433   : > { %p14_p1 = scmp.ge.s32.totalorder %s17_s23, 5   ;;  %s3619_s22 = smov %s3621_s25 }
 0x435   :  { %16 = sbr.rel (!%p14_p1) target bundleno = 2 (0x2), region = 85 }
 0x43a   :  { %2007 = vsyncpa [#allocation4], 1 }
 0x43b   :  { %2009 = vsyncpa [#allocation4 + $0x1], 1 }

</bundles_post_ra>
